<compile_context>
chip_gen: v6e
topology: v6e:2x2x1
jax: 0.10.0
libtpu: 0.0.40
codegen_flags: <defaults>
</compile_context>

<pallas_src>
import math
from functools import partial

import jax
import jax.numpy as jnp
from jax import lax
from jax.experimental import pallas as pl
from jax.experimental.pallas import tpu as pltpu


def _round_up(x, m):
    return ((x + m - 1) // m) * m


# ------------------- fused (conv-as-matmul + Softmax2d) kernel -------------------
#
# a_ref : (tm, tk)  bf16   im2col rows (N*Ho*Wo positions x Cin*kh*kw features)
# b_ref : (tk, tn)  bf16   weight matrix tile, tn == padded Cout
# o_ref : (tm, tn)  f32    softmax over the valid channel lanes
# acc   : (tm, tn)  f32    VMEM accumulator, resident across the K grid axis

def _conv_softmax_kernel(a_ref, b_ref, o_ref, acc_ref, *, cout, masked):
    k = pl.program_id(2)

    @pl.when(k == 0)
    def _():
        acc_ref[...] = jnp.zeros_like(acc_ref)

    # bf16 x bf16 -> f32 accumulate on the MXU.
    acc_ref[...] += jnp.dot(a_ref[...], b_ref[...],
                            preferred_element_type=jnp.float32)

    @pl.when(k == pl.num_programs(2) - 1)
    def _():
        s = acc_ref[...]
        if masked:  # static: only emitted when Cout was padded to 128 lanes
            lane = lax.broadcasted_iota(jnp.int32, s.shape, 1)
            s = jnp.where(lane < cout, s, -jnp.inf)
        m = jnp.max(s, axis=-1, keepdims=True)
        e = jnp.exp(s - m)                                    # EUP
        denom = jnp.sum(e, axis=-1, keepdims=True)            # XLU reduce
        o_ref[...] = e * pl.reciprocal(denom, approx=True)    # EUP recip


# --------------------------------- module ---------------------------------

class ASPPModule22:
    """JAX/Pallas port of _ASPPModule22: dilated conv (bias=False) + Softmax2d."""

    def __init__(self, inplanes, planes, kernel_size, padding, dilation, seed=0):
        self.inplanes = inplanes
        self.planes = planes
        self.ksize = kernel_size
        self.padding = padding
        self.dilation = dilation

        # kaiming_normal_ init (fan_in, relu gain), matching the torch module.
        fan_in = inplanes * kernel_size * kernel_size
        std = math.sqrt(2.0 / fan_in)
        key = jax.random.PRNGKey(seed)
        w = jax.random.normal(
            key, (planes, inplanes, kernel_size, kernel_size), jnp.float32) * std
        self.w_nchw = w  # kept in f32 (reference / "checkpoint" form)

        # --- pad / reshape / cast the weight matrix ONCE at build time ---
        K = inplanes * kernel_size * kernel_size
        self.K = K
        self.Np = _round_up(planes, 128)            # lane-dense output tile
        k128 = _round_up(K, 128)
        self.tk = k128 if k128 <= 768 else 256      # 1 K-step when K is small
        self.Kp = _round_up(K, self.tk)
        wm = jnp.transpose(w, (1, 2, 3, 0)).reshape(K, planes)   # (Cin*kh*kw, Cout)
        wm = jnp.pad(wm, ((0, self.Kp - K), (0, self.Np - planes)))
        self.w_mat = wm.astype(jnp.bfloat16)        # MXU operand, built once

    def __call__(self, x):
        N, Cin, H, W = x.shape
        assert Cin == self.inplanes
        kh = kw = self.ksize
        pad, dil = self.padding, self.dilation
        Ho = H + 2 * pad - dil * (kh - 1)           # stride is fixed to 1
        Wo = W + 2 * pad - dil * (kw - 1)

        # im2col: slicing glue only (no gathers), rows = spatial positions.
        xp = jnp.pad(x, ((0, 0), (0, 0), (pad, pad), (pad, pad)))
        patches = []
        for i in range(kh):
            for j in range(kw):
                hs, ws = i * dil, j * dil
                patches.append(xp[:, :, hs:hs + Ho, ws:ws + Wo])
        col = jnp.stack(patches, axis=0).reshape(kh, kw, N, Cin, Ho, Wo)
        col = jnp.transpose(col, (2, 4, 5, 3, 0, 1))
        col = col.reshape(N * Ho * Wo, Cin * kh * kw).astype(jnp.bfloat16)

        M = N * Ho * Wo
        # tm: large enough to stay near the HBM roofline, small enough that the
        # "parallel" row axis has >=2 iterations (v7x megacore) at small M.
        tm = 256 if M >= 512 else max(8, _round_up(M, 8))
        Mp = _round_up(M, tm)
        pad_rows, pad_k = Mp - M, self.Kp - self.K
        if pad_rows or pad_k:                        # static check, usually no-op
            col = jnp.pad(col, ((0, pad_rows), (0, pad_k)))

        tn, tk = self.Np, self.tk
        kernel = partial(_conv_softmax_kernel,
                         cout=self.planes, masked=(self.Np != self.planes))

        out = pl.pallas_call(
            kernel,
            out_shape=jax.ShapeDtypeStruct((Mp, self.Np), jnp.float32),
            grid_spec=pltpu.PrefetchScalarGridSpec(
                num_scalar_prefetch=0,
                grid=(Mp // tm, self.Np // tn, self.Kp // tk),
                in_specs=[pl.BlockSpec((tm, tk), lambda i, j, k: (i, k)),
                          pl.BlockSpec((tk, tn), lambda i, j, k: (k, j))],
                out_specs=pl.BlockSpec((tm, tn), lambda i, j, k: (i, j)),
                scratch_shapes=[pltpu.VMEM((tm, tn), jnp.float32)]),
            compiler_params=pltpu.CompilerParams(
                dimension_semantics=("parallel", "parallel", "arbitrary")),
        )(col, self.w_mat)

        out = out[:M, :self.planes]
        # rows (N*Ho*Wo, Cout) -> NCHW only at the module boundary.
        return jnp.transpose(out.reshape(N, Ho, Wo, self.planes), (0, 3, 1, 2))


# ------------------------------ pure-JAX reference ------------------------------

def _reference(x, w, padding, dilation):
    y = lax.conv_general_dilated(
        x, w, window_strides=(1, 1),
        padding=[(padding, padding), (padding, padding)],
        rhs_dilation=(dilation, dilation),
        dimension_numbers=('NCHW', 'OIHW', 'NCHW'))
    return jax.nn.softmax(y, axis=1)     # Softmax2d == softmax over channels


# ---------------------------------- main ----------------------------------

if __name__ == "__main__":
    # Small shapes consistent with an ASPP branch.
    batch, inplanes, planes = 2, 64, 128
    H = W = 16
    kernel_size, padding, dilation = 3, 2, 2

    module = ASPPModule22(inplanes, planes, kernel_size, padding, dilation, seed=0)

    key = jax.random.PRNGKey(0)
    x = jax.random.normal(key, (batch, inplanes, H, W), jnp.float32)

    fwd = jax.jit(lambda inp: module(inp))
    out = jax.block_until_ready(fwd(x))

    assert out.shape == (batch, planes, H, W), out.shape
    assert bool(jnp.all(jnp.isfinite(out)))

    # Softmax2d property: channels sum to 1 at every spatial position.
    ch_sum = jnp.sum(out, axis=1)
    assert float(jnp.max(jnp.abs(ch_sum - 1.0))) < 5e-3

    # Numerical check vs. pure-JAX f32 reference (bf16 MXU operands -> loose tol).
    ref = _reference(x, module.w_nchw, padding, dilation)
    assert float(jnp.max(jnp.abs(out - ref))) < 2e-2

    print("KERNEL_OK")
</pallas_src>

<mosaic_0001>
module attributes {stable_mosaic.version = 11 : i64} {
  func.func @_conv_softmax_kernel(%arg0: i32, %arg1: i32, %arg2: i32, %arg3: memref<256x640xbf16, #tpu.memory_space<vmem>>, %arg4: memref<640x128xbf16, #tpu.memory_space<vmem>>, %arg5: memref<256x128xf32, #tpu.memory_space<vmem>>, %arg6: memref<256x128xf32, #tpu.memory_space<vmem>>) attributes {dimension_semantics = [#tpu.dimension_semantics<parallel>, #tpu.dimension_semantics<parallel>, #tpu.dimension_semantics<arbitrary>], iteration_bounds = array<i64: 2, 1, 1>, scalar_prefetch = 0 : i64, scratch_operands = 1 : i64, tpu.core_type = #tpu.core_type<tc>, window_params = [{transform_indices = @transform_0, window_bounds = array<i64: 256, 640>}, {transform_indices = @transform_1, window_bounds = array<i64: 640, 128>}, {transform_indices = @transform_2, window_bounds = array<i64: 256, 128>}]} {
    %c0_i32 = arith.constant 0 : i32
    %0 = arith.cmpi eq, %arg2, %c0_i32 : i32
    %1 = arith.extui %0 : i1 to i32
    %c0_i32_0 = arith.constant 0 : i32
    %2 = arith.cmpi ne, %1, %c0_i32_0 : i32
    scf.if %2 {
      %cst_10 = arith.constant 0.000000e+00 : f32
      %12 = vector.broadcast %cst_10 : f32 to vector<256x128xf32>
      %c0_11 = arith.constant 0 : index
      %c0_12 = arith.constant 0 : index
      %13 = vector.load %arg6[%c0_11, %c0_12] : memref<256x128xf32, #tpu.memory_space<vmem>>, vector<256x128xf32>
      tpu.vector_store %arg6[%c0_11, %c0_12], %12 {strides = array<i32>} : memref<256x128xf32, #tpu.memory_space<vmem>>, vector<256x128xf32>,
    } else {
    }
    %c0 = arith.constant 0 : index
    %c0_1 = arith.constant 0 : index
    %3 = vector.load %arg6[%c0, %c0_1] : memref<256x128xf32, #tpu.memory_space<vmem>>, vector<256x128xf32>
    %c0_2 = arith.constant 0 : index
    %c0_3 = arith.constant 0 : index
    %4 = vector.load %arg3[%c0_2, %c0_3] : memref<256x640xbf16, #tpu.memory_space<vmem>>, vector<256x640xbf16>
    %c0_4 = arith.constant 0 : index
    %c0_5 = arith.constant 0 : index
    %5 = vector.load %arg4[%c0_4, %c0_5] : memref<640x128xbf16, #tpu.memory_space<vmem>>, vector<640x128xbf16>
    %cst = arith.constant dense<0.000000e+00> : vector<256x128xf32>
    %6 = tpu.matmul %4, %5, %cst {dimension_numbers = #tpu.dot_dimension_numbers<[1], [0], [0], [1], [0, 0, 1, 1], [], []>} : vector<256x640xbf16>, vector<640x128xbf16>, vector<256x128xf32> -> vector<256x128xf32>
    %7 = arith.addf %3, %6 : vector<256x128xf32>
    %c0_6 = arith.constant 0 : index
    %c0_7 = arith.constant 0 : index
    %8 = vector.load %arg6[%c0_6, %c0_7] : memref<256x128xf32, #tpu.memory_space<vmem>>, vector<256x128xf32>
    tpu.vector_store %arg6[%c0_6, %c0_7], %7 {strides = array<i32>} : memref<256x128xf32, #tpu.memory_space<vmem>>, vector<256x128xf32>,
    %c0_i32_8 = arith.constant 0 : i32
    %9 = arith.cmpi eq, %arg2, %c0_i32_8 : i32
    %10 = arith.extui %9 : i1 to i32
    %c0_i32_9 = arith.constant 0 : i32
    %11 = arith.cmpi ne, %10, %c0_i32_9 : i32
    scf.if %11 {
      %c0_10 = arith.constant 0 : index
      %c0_11 = arith.constant 0 : index
      %12 = vector.load %arg6[%c0_10, %c0_11] : memref<256x128xf32, #tpu.memory_space<vmem>>, vector<256x128xf32>
      %cst_12 = arith.constant dense<0xFF800000> : vector<256xf32>
      %13 = vector.multi_reduction <maximumf>, %12, %cst_12 [1] : vector<256x128xf32> to vector<256xf32>
      %14 = vector.shape_cast %13 : vector<256xf32> to vector<256x1xf32>
      %15 = vector.broadcast %14 : vector<256x1xf32> to vector<256x128xf32>
      %16 = arith.subf %12, %15 : vector<256x128xf32>
      %17 = math.exp %16 : vector<256x128xf32>
      %cst_13 = arith.constant dense<0.000000e+00> : vector<256xf32>
      %18 = vector.multi_reduction <add>, %17, %cst_13 [1] : vector<256x128xf32> to vector<256xf32>
      %19 = vector.shape_cast %18 : vector<256xf32> to vector<256x1xf32>
      %20 = tpu.reciprocal %19 {approx = true} : vector<256x1xf32> -> vector<256x1xf32>
      %21 = vector.broadcast %20 : vector<256x1xf32> to vector<256x128xf32>
      %22 = arith.mulf %17, %21 : vector<256x128xf32>
      %c0_14 = arith.constant 0 : index
      %c0_15 = arith.constant 0 : index
      %23 = vector.load %arg5[%c0_14, %c0_15] : memref<256x128xf32, #tpu.memory_space<vmem>>, vector<256x128xf32>
      tpu.vector_store %arg5[%c0_14, %c0_15], %22 {strides = array<i32>} : memref<256x128xf32, #tpu.memory_space<vmem>>, vector<256x128xf32>,
    } else {
    }
    return
  }
  func.func @transform_0(%arg0: i32, %arg1: i32, %arg2: i32) -> (i32, i32) {
    %c0_i32 = arith.constant 0 : i32
    return %arg0, %arg2 : i32, i32
  }
  func.func @transform_1(%arg0: i32, %arg1: i32, %arg2: i32) -> (i32, i32) {
    %c0_i32 = arith.constant 0 : i32
    return %arg2, %arg1 : i32, i32
  }
  func.func @transform_2(%arg0: i32, %arg1: i32, %arg2: i32) -> (i32, i32) {
    %c0_i32 = arith.constant 0 : i32
    return %arg0, %arg1 : i32, i32
  }
}

</mosaic_0001>

<bundles_post_ra>
// kernel: _lambda_.1
= control target key start
LH: loop header
LB: loop body
LE: loop exit
PB: predicated region body
PF: predicated region fallthrough
CT: control target
= control target key end

     0   :  { %7 = vsyncpa [#allocation4], 0  ;;  %s3833_s0 = inlined_call_operand.vmem [shape: bf16[512,640], index: 0, kind: input, shape index: {}]   ;;  %s3834_s1 = inlined_call_operand.vmem [shape: bf16[640,128], index: 1, kind: input, shape index: {}]   ;;  %s3835_s2 = inlined_call_operand.hbm [shape: f32[512,128], index: 2, kind: output, shape index: {}]  }
   0x1   :  { %9 = vsyncpa [#allocation4 + $0x1], 0  ;;  %s3016_s9 = smov 0   ;;  %s3018_s10 = smov 0  }
   0x2   :  { %s3020_s11 = smov 0   ;;  %s3022_s12 = smov 0  }
   0x3   :  { %s3024_s13 = smov 0   ;;  %s3026_s14 = smov 0  }
   0x4 LB: > { %s2135_s15 = sadd.s32 4294967295, %s2996_s14   ;;  %s2136_s16 = sadd.s32 4294967294, %s2996_s14   ;;  %s2996_s14 = sphi %s3026_s14, %s15_s14   ;;  %s2992_s13 = sphi %s3024_s13, %s3878_s13   ;;  %s2988_s12 = sphi %s3022_s12, %s3877_s12   ;;  %s2984_s11 = sphi %s3020_s11, %s3876_s11   ;;  %s2980_s10 = sphi %s3018_s10, %s3875_s10   ;;  %s2976_s9 = sphi %s3016_s9, %s3874_s9  }
   0x5   : > { %s34_s17 = sadd.s32 1, %s2992_s13  ;;  %s99_s18 = sadd.s32 1, %s2984_s11 }
   0x6   : > { %p36_p0 = scmp.ge.s32.totalorder %s34_s17, 2  ;;  %p109_p1 = scmp.ne.s32.totalorder %s2984_s11, %s2980_s10 }
   0x7   : > { %p110_p2 = scmp.eq.s32.totalorder %s2135_s15, 1  ;;  %p115_p3 = scmp.ne.s32.totalorder %s2980_s10, %s2976_s9 }
   0x8   : > { %s3880_s17 = smov (%p36_p0, %s34_s17), 0  ;;  %p116_p5 = scmp.eq.s32.totalorder %s2136_s16, 1 }
   0x9   : > { %p3056_p4 = por %p110_p2, %p109_p1  ;;  %s94_s20 = ssub.s32 %s2992_s13, %s3880_s17 }
   0xa   : > { %p2140_p6 = scmp.ge.s32.totalorder %s2996_s14, 1  ;;  %p97_p7 = scmp.eq.s32.totalorder %s94_s20, 0 }
   0xb   : > { %p3063_p8 = por %p116_p5, %p115_p3  ;;  %p161_p9 = scmp.lt.s32.totalorder %s2996_s14, 3 }
   0xc   : > { %s3069_s22 = scalar_select %p97_p7, %s2984_s11, %s99_s18  }
   0xd   : > { %p162_p10 = pnand %p2140_p6, %p161_p9 }
   0xf   : > { %165 = sbr.rel (%p162_p10) target bundleno = 734 (0x2de), region = 28 }
  0x14   : > { %v2640_v0 = vld [vmem:[%s3834_s1 + $0x78] sm:$0xff]   ;;  %s2142_s25 = sshll.u32 %s2988_s12, 5  ;;  %v2642_v2 = vld [vmem:[%s3834_s1 + $0x70] sm:$0xff]   ;;  %v2644_v4 = vld [vmem:[%s3834_s1 + $0x68] sm:$0xff]   ;;  %s2269_s23 = sshll.u32 %s2988_s12, 12 }
  0x15   : > { %v2641_v1 = vld [vmem:[%s3834_s1 + $0x38] sm:$0xff]   ;;  %2270 = vmatprep.subr.bf16.mxu0 %v2640_v0  ;;  %2566 = vmatprep.subr.bf16.mxu1 %v2640_v0  ;;  %p198_p11 = scmp.lt.s32.totalorder %s2142_s25, 63  ;;  %v2643_v3 = vld [vmem:[%s3834_s1 + $0x30] sm:$0xff]   ;;  %v2645_v5 = vld [vmem:[%s3834_s1 + $0x28] sm:$0xff]   ;;  %s2998_s30 = smov [#allocation3]  }
  0x16   : > { %2271 = vmatpush3.bf16.msra.mxu0 %v2641_v1  ;;  %2574 = vmatpush3.bf16.msra.mxu1 %v2641_v1  ;;  %v2646_v6 = vld [vmem:[%s3834_s1 + $0x60] sm:$0xff]   ;;  %v2648_v8 = vld [vmem:[%s3834_s1 + $0x58] sm:$0xff]   ;;  %v2650_v10 = vld [vmem:[%s3834_s1 + $0x50] sm:$0xff]   ;;  %s2924_s3 = sshll.u32 %s2998_s30, 4  ;;  %s2925_s3 = int_to_ptr.vmem [resolvable:$false] %s2924_s3 }
  0x17   : > { %2272 = vmatprep.subr.bf16.mxu0 %v2642_v2  ;;  %2567 = vmatprep.subr.bf16.mxu1 %v2642_v2  ;;  %s3882_s25 = smov (!%p198_p11, %s2142_s25), 63  ;;  %v2647_v7 = vld [vmem:[%s3834_s1 + $0x20] sm:$0xff]   ;;  %v2649_v9 = vld [vmem:[%s3834_s1 + $0x18] sm:$0xff]   ;;  %v2651_v13 = vld [vmem:[%s3834_s1 + $0x10] sm:$0xff]   ;;  %s2926_s4 = scalar_lea.vmem %s2925_s3, 8192 }
  0x18   : > { %s2582_s16 = smul.u32 20, %s3882_s25  ;;  %v2652_v14 = vld [vmem:[%s3834_s1 + $0x48] sm:$0xff]   ;;  %v2654_v16 = vld [vmem:[%s3834_s1 + $0x40] sm:$0xff]   ;;  %v2662_v18 = vld [vmem:[%s3834_s1 + $0xf8] sm:$0xff]   ;;  %s3780_s25 = scalar_lea.hbm %s3835_s2, %s2269_s23 }
  0x19   : > { %v2653_v15 = vld [vmem:[%s3834_s1 + $0x8] sm:$0xff]   ;;  %v2655_v17 = vld [vmem:[%s3834_s1] sm:$0xff]   ;;  %v2663_v20 = vld [vmem:[%s3834_s1 + $0x138] sm:$0xff]  }
  0x1a   : > { %2273 = vmatpush3.bf16.msra.mxu0 %v2643_v3  ;;  %2575 = vmatpush3.bf16.msra.mxu1 %v2643_v3  ;;  %s3102_s28 = scalar_lea.vmem %s3833_s0, %s2582_s16  ;;  %v2664_v22 = vld [vmem:[%s3834_s1 + $0xb8] sm:$0xff]   ;;  %v2665_v23 = vld [vmem:[%s3834_s1 + $0xf0] sm:$0xff]   ;;  %v2673_v29 = vld [vmem:[%s3834_s1 + $0xe8] sm:$0xff]  }
  0x1b   : > { %2274 = vmatprep.subr.bf16.mxu0 %v2644_v4  ;;  %2568 = vmatprep.subr.bf16.mxu1 %v2644_v4  ;;  %v2658_v11 = vld [vmem:[%s3102_s28 + $0x4] ss:$20 sps:$4 sm:$0xff]   ;;  %v2656_v19 = vld [vmem:[%s3102_s28] ss:$20 sps:$4 sm:$0xff]   ;;  %v2671_v28 = vld [vmem:[%s3102_s28 + $0x28] ss:$20 sps:$4 sm:$0xff]  }
  0x1c   : > { %v2661_v12 = vld [vmem:[%s3102_s28 + $0x1e4] ss:$20 sps:$4 sm:$0xff]   ;;  %1151 = vmatprep.mubr.bf16.mxu0 %v2658_v11  ;;  %v2659_v21 = vld [vmem:[%s3102_s28 + $0x1e0] ss:$20 sps:$4 sm:$0xff]   ;;  %v2672_v30 = vld [vmem:[%s3102_s28 + $0x208] ss:$20 sps:$4 sm:$0xff]  }
  0x1d   : > { %1247 = vmatprep.mubr.bf16.mxu1 %v2661_v12  ;;  %v2667_v24 = vld [vmem:[%s3102_s28 + $0x2c] ss:$20 sps:$4 sm:$0xff]   ;;  %v2676_v26 = vld [vmem:[%s3834_s1 + $0x130] sm:$0xff]   ;;  %v2684_v38 = vld [vmem:[%s3834_s1 + $0xd8] sm:$0xff]  }
  0x1e   : > { %2275 = vmatpush3.bf16.msra.mxu0 %v2645_v5  ;;  %2576 = vmatpush3.bf16.msra.mxu1 %v2645_v5  ;;  %v2669_v25 = vld [vmem:[%s3102_s28 + $0x20c] ss:$20 sps:$4 sm:$0xff]   ;;  %v2666_v27 = vld [vmem:[%s3834_s1 + $0xb0] sm:$0xff]   ;;  %v2685_v40 = vld [vmem:[%s3834_s1 + $0x98] sm:$0xff]  }
  0x1f   : > { %2276 = vmatprep.subr.bf16.mxu0 %v2646_v6  ;;  %2569 = vmatprep.subr.bf16.mxu1 %v2646_v6  ;;  %v2674_v31 = vld [vmem:[%s3834_s1 + $0xa8] sm:$0xff]   ;;  %v2675_v33 = vld [vmem:[%s3834_s1 + $0xe0] sm:$0xff]   ;;  %v2686_v41 = vld [vmem:[%s3834_s1 + $0xd0] sm:$0xff]  }
  0x20   : > { %v2678_v32 = vld [vmem:[%s3102_s28 + $0x54] ss:$20 sps:$4 sm:$0xff]   ;;  %v2677_v36 = vld [vmem:[%s3834_s1 + $0xa0] sm:$0xff]   ;;  %v2688_v42 = vld [vmem:[%s3102_s28 + $0x7c] ss:$20 sps:$4 sm:$0xff]  }
  0x21   : > { %v2680_v34 = vld [vmem:[%s3102_s28 + $0x234] ss:$20 sps:$4 sm:$0xff]   ;;  %v2682_v37 = vld [vmem:[%s3102_s28 + $0x50] ss:$20 sps:$4 sm:$0xff]   ;;  %v2692_v46 = vld [vmem:[%s3102_s28 + $0x78] ss:$20 sps:$4 sm:$0xff]  }
  0x22   : > { %2277 = vmatpush3.bf16.msra.mxu0 %v2647_v7  ;;  %2577 = vmatpush3.bf16.msra.mxu1 %v2647_v7  ;;  %v2695_v35 = vld [vmem:[%s3834_s1 + $0x128] sm:$0xff]   ;;  %v2683_v39 = vld [vmem:[%s3102_s28 + $0x230] ss:$20 sps:$4 sm:$0xff]   ;;  %v2718_v52 = vld [vmem:[%s3834_s1 + $0x118] sm:$0xff]  }
  0x23   : > { %2278 = vmatprep.subr.bf16.mxu0 %v2648_v8  ;;  %2570 = vmatprep.subr.bf16.mxu1 %v2648_v8  ;;  %v2690_v43 = vld [vmem:[%s3102_s28 + $0x25c] ss:$20 sps:$4 sm:$0xff]   ;;  %v2705_v44 = vld [vmem:[%s3834_s1 + $0x120] sm:$0xff]   ;;  %v2693_v47 = vld [vmem:[%s3102_s28 + $0x258] ss:$20 sps:$4 sm:$0xff]  }
  0x24   : > { %v2687_v45 = vld [vmem:[%s3834_s1 + $0x90] sm:$0xff]   ;;  %v2694_v48 = vld [vmem:[%s3834_s1 + $0xc8] sm:$0xff]   ;;  %v2697_v50 = vld [vmem:[%s3834_s1 + $0xc0] sm:$0xff]  }
  0x25   : > { %v2696_v49 = vld [vmem:[%s3834_s1 + $0x88] sm:$0xff]   ;;  %v2699_v51 = vld [vmem:[%s3102_s28 + $0xa4] ss:$20 sps:$4 sm:$0xff]   ;;  %v2725_v55 = vld [vmem:[%s3834_s1 + $0x110] sm:$0xff]  }
  0x26   : > { %2279 = vmatpush3.bf16.msra.mxu0 %v2649_v9  ;;  %2578 = vmatpush3.bf16.msra.mxu1 %v2649_v9  ;;  %v2703_v53 = vld [vmem:[%s3102_s28 + $0xc] ss:$20 sps:$4 sm:$0xff]   ;;  %v2701_v56 = vld [vmem:[%s3102_s28 + $0x8] ss:$20 sps:$4 sm:$0xff]   ;;  %v2711_v63 = vld [vmem:[%s3102_s28 + $0x30] ss:$20 sps:$4 sm:$0xff]  }
  0x27   : > { %2280 = vmatprep.subr.bf16.mxu0 %v2650_v10  ;;  %2571 = vmatprep.subr.bf16.mxu1 %v2650_v10  ;;  %v2698_v54 = vld [vmem:[%s3834_s1 + $0x80] sm:$0xff]   ;;  %v2708_v59 = vld [vmem:[%s3102_s28 + $0x34] ss:$20 sps:$4 sm:$0xff]   ;;  %v2714_v1 = vld [vmem:[%s3102_s28 + $0x5c] ss:$20 sps:$4 sm:$0xff]  }
  0x28   : > { %v2704_v57 = vld [vmem:[%s3102_s28 + $0xa0] ss:$20 sps:$4 sm:$0xff]   ;;  %v2738_v60 = vld [vmem:[%s3834_s1 + $0x108] sm:$0xff]   ;;  %v2716_v2 = vld [vmem:[%s3102_s28 + $0xf0] ss:$20 sps:$4 sm:$0xff]  }
  0x29   : > { %v2706_v58 = vld [vmem:[%s3102_s28 + $0xcc] ss:$20 sps:$4 sm:$0xff]   ;;  %v2710_v61 = vld [vmem:[%s3102_s28 + $0xc8] ss:$20 sps:$4 sm:$0xff]   ;;  %v2721_v5 = vld [vmem:[%s3102_s28 + $0x84] ss:$20 sps:$4 sm:$0xff]  }
  0x2a   : > { %2281 = vmatpush3.bf16.msra.mxu0 %v2651_v13  ;;  %2579 = vmatpush3.bf16.msra.mxu1 %v2651_v13  ;;  %v2745_v62 = vld [vmem:[%s3834_s1 + $0x100] sm:$0xff]   ;;  %v2712_v0 = vld [vmem:[%s3102_s28 + $0xf4] ss:$20 sps:$4 sm:$0xff]   ;;  %v2717_v3 = vld [vmem:[%s3102_s28 + $0x58] ss:$20 sps:$4 sm:$0xff]  }
  0x2b   : > { %2282 = vmatprep.subr.bf16.mxu0 %v2652_v14  ;;  %2572 = vmatprep.subr.bf16.mxu1 %v2652_v14  ;;  %v2719_v4 = vld [vmem:[%s3102_s28 + $0x11c] ss:$20 sps:$4 sm:$0xff]   ;;  %v2723_v6 = vld [vmem:[%s3102_s28 + $0x118] ss:$20 sps:$4 sm:$0xff]   ;;  %v2724_v7 = vld [vmem:[%s3102_s28 + $0x80] ss:$20 sps:$4 sm:$0xff]  }
  0x2c   : > { %v2726_v8 = vld [vmem:[%s3102_s28 + $0x144] ss:$20 sps:$4 sm:$0xff]   ;;  %v2728_v9 = vld [vmem:[%s3102_s28 + $0xac] ss:$20 sps:$4 sm:$0xff]   ;;  %v2731_v11 = vld [vmem:[%s3102_s28 + $0xa8] ss:$20 sps:$4 sm:$0xff]  }
  0x2d   : > { %v2730_v10 = vld [vmem:[%s3102_s28 + $0x140] ss:$20 sps:$4 sm:$0xff]   ;;  %v2736_v14 = vld [vmem:[%s3102_s28 + $0x168] ss:$20 sps:$4 sm:$0xff]  }
  0x2e   : > { %2283 = vmatpush3.bf16.msra.mxu0 %v2653_v15  ;;  %2580 = vmatpush3.bf16.msra.mxu1 %v2653_v15  ;;  %v2732_v12 = vld [vmem:[%s3102_s28 + $0x16c] ss:$20 sps:$4 sm:$0xff]   ;;  %v2734_v13 = vld [vmem:[%s3102_s28 + $0xd4] ss:$20 sps:$4 sm:$0xff]   ;;  %v2737_v15 = vld [vmem:[%s3102_s28 + $0xd0] ss:$20 sps:$4 sm:$0xff]  }
  0x2f   : > { %2284 = vmatprep.subr.bf16.mxu0 %v2654_v16  ;;  %2573 = vmatprep.subr.bf16.mxu1 %v2654_v16  ;;  %v2739_v16 = vld [vmem:[%s3102_s28 + $0x194] ss:$20 sps:$4 sm:$0xff]  }
  0x32   : > { %2285 = vmatpush3.bf16.msra.mxu0 %v2655_v17  ;;  %2581 = vmatpush3.bf16.msra.mxu1 %v2655_v17  ;;  %v2741_v17 = vld [vmem:[%s3102_s28 + $0xfc] ss:$20 sps:$4 sm:$0xff]  }
  0x33   : > { %2382 = vmatprep.subr.bf16.mxu1 %v2662_v18  ;;  %2518 = vmatprep.subr.bf16.mxu0 %v2663_v20  ;;  %v2743_v18 = vld [vmem:[%s3102_s28 + $0x190] ss:$20 sps:$4 sm:$0xff]  }
  0x35   : > { %1152 = vmatmul.mubr.bf16.vlgmr.msra.gmra.mxu0 %v2656_v19  ;;  %1248 = vmatmul.mubr.bf16.vlgmr.msra.gmra.mxu1 %v2659_v21  ;;  %v2744_v19 = vld [vmem:[%s3102_s28 + $0xf8] ss:$20 sps:$4 sm:$0xff]  }
  0x36   : > { %2383 = vmatpush3.bf16.msra.mxu1 %v2664_v22  ;;  %2519 = vmatpush3.bf16.msra.mxu0 %v2663_v20  ;;  %v2746_v20 = vld [vmem:[%s3102_s28 + $0x1bc] ss:$20 sps:$4 sm:$0xff]   ;;  %v2748_v21 = vld [vmem:[%s3102_s28 + $0x124] ss:$20 sps:$4 sm:$0xff]  }
  0x37   : > { %2384 = vmatprep.subr.bf16.mxu1 %v2665_v23  ;;  %1159 = vmatprep.mubr.bf16.mxu0 %v2667_v24  ;;  %v2750_v22 = vld [vmem:[%s3102_s28 + $0x1b8] ss:$20 sps:$4 sm:$0xff]   ;;  %v2751_v23 = vld [vmem:[%s3102_s28 + $0x120] ss:$20 sps:$4 sm:$0xff]  }
  0x38   : > { %1255 = vmatprep.mubr.bf16.mxu1 %v2669_v25  ;;  %2520 = vmatprep.subr.bf16.mxu0 %v2676_v26  ;;  %v2752_v24 = vld [vmem:[%s3102_s28 + $0x14c] ss:$20 sps:$4 sm:$0xff]   ;;  %v2754_v25 = vld [vmem:[%s3102_s28 + $0x10] ss:$20 sps:$4 sm:$0xff]  }
  0x3a   : > { %2385 = vmatpush3.bf16.msra.mxu1 %v2666_v27  ;;  %2521 = vmatpush3.bf16.msra.mxu0 %v2676_v26  ;;  %v2755_v26 = vld [vmem:[%s3102_s28 + $0x148] ss:$20 sps:$4 sm:$0xff]   ;;  %v2756_v27 = vld [vmem:[%s3102_s28 + $0x38] ss:$20 sps:$4 sm:$0xff]  }
  0x3b   : > { %2386 = vmatprep.subr.bf16.mxu1 %v2673_v29  ;;  %2522 = vmatprep.subr.bf16.mxu0 %v2695_v35  ;;  %v2759_v29 = vld [vmem:[%s3102_s28 + $0x60] ss:$20 sps:$4 sm:$0xff]  }
  0x3d   : > { %1160 = vmatmul.mubr.bf16.gmra.mxu0 %v2671_v28  ;;  %1256 = vmatmul.mubr.bf16.gmra.mxu1 %v2672_v30  ;;  %v2757_v28 = vld [vmem:[%s3102_s28 + $0x174] ss:$20 sps:$4 sm:$0xff]   ;;  %v2760_v30 = vld [vmem:[%s3102_s28 + $0x170] ss:$20 sps:$4 sm:$0xff]  }
  0x3e   : > { %2387 = vmatpush3.bf16.msra.mxu1 %v2674_v31  ;;  %1167 = vmatprep.mubr.bf16.mxu0 %v2678_v32  ;;  %v2761_v31 = vld [vmem:[%s3102_s28 + $0x88] ss:$20 sps:$4 sm:$0xff]  }
  0x3f   : > { %2388 = vmatprep.subr.bf16.mxu1 %v2675_v33  ;;  %1263 = vmatprep.mubr.bf16.mxu1 %v2680_v34  ;;  %v2762_v32 = vld [vmem:[%s3102_s28 + $0x19c] ss:$20 sps:$4 sm:$0xff]   ;;  %v2765_v34 = vld [vmem:[%s3102_s28 + $0x198] ss:$20 sps:$4 sm:$0xff]  }
  0x40   : > { %2523 = vmatpush3.bf16.msra.mxu0 %v2695_v35  ;;  %v2764_v33 = vld [vmem:[%s3102_s28 + $0xb0] ss:$20 sps:$4 sm:$0xff]   ;;  %v2766_v35 = vld [vmem:[%s3102_s28 + $0xd8] ss:$20 sps:$4 sm:$0xff]  }
  0x41   : > { %2524 = vmatprep.subr.bf16.mxu0 %v2705_v44 }
  0x42   : > { %2389 = vmatpush3.bf16.msra.mxu1 %v2677_v36  ;;  %v2767_v36 = vld [vmem:[%s3102_s28 + $0x1c4] ss:$20 sps:$4 sm:$0xff]  }
  0x43   : > { %2390 = vmatprep.subr.bf16.mxu1 %v2684_v38  ;;  %v2770_v38 = vld [vmem:[%s3102_s28 + $0x1c0] ss:$20 sps:$4 sm:$0xff]  }
  0x44   : > { %2525 = vmatpush3.bf16.msra.mxu0 %v2705_v44  ;;  %v2777_v44 = vld [vmem:[%s3102_s28 + $0x214] ss:$20 sps:$4 sm:$0xff]  }
  0x45   : > { %1168 = vmatmul.mubr.bf16.gmra.mxu0 %v2682_v37  ;;  %1264 = vmatmul.mubr.bf16.gmra.mxu1 %v2683_v39  ;;  %v2769_v37 = vld [vmem:[%s3102_s28 + $0x100] ss:$20 sps:$4 sm:$0xff]   ;;  %v2771_v39 = vld [vmem:[%s3102_s28 + $0x128] ss:$20 sps:$4 sm:$0xff]  }
  0x46   : > { %2391 = vmatpush3.bf16.msra.mxu1 %v2685_v40  ;;  %1175 = vmatprep.mubr.bf16.mxu0 %v2688_v42  ;;  %v2772_v40 = vld [vmem:[%s3102_s28 + $0x1ec] ss:$20 sps:$4 sm:$0xff]   ;;  %v2775_v42 = vld [vmem:[%s3102_s28 + $0x1e8] ss:$20 sps:$4 sm:$0xff]  }
  0x47   : > { %2392 = vmatprep.subr.bf16.mxu1 %v2686_v41  ;;  %1271 = vmatprep.mubr.bf16.mxu1 %v2690_v43  ;;  %v2774_v41 = vld [vmem:[%s3102_s28 + $0x150] ss:$20 sps:$4 sm:$0xff]   ;;  %v2776_v43 = vld [vmem:[%s3102_s28 + $0x178] ss:$20 sps:$4 sm:$0xff]  }
  0x48   : > { %2526 = vmatprep.subr.bf16.mxu0 %v2718_v52 }
  0x49   : > { %2527 = vmatpush3.bf16.msra.mxu0 %v2718_v52  ;;  %v2787_v52 = vld [vmem:[%s3102_s28 + $0x264] ss:$20 sps:$4 sm:$0xff]  }
  0x4a   : > { %2393 = vmatpush3.bf16.msra.mxu1 %v2687_v45  ;;  %2528 = vmatprep.subr.bf16.mxu0 %v2725_v55  ;;  %v2779_v45 = vld [vmem:[%s3102_s28 + $0x1a0] ss:$20 sps:$4 sm:$0xff]  }
  0x4b   : > { %2394 = vmatprep.subr.bf16.mxu1 %v2694_v48  ;;  %v2782_v48 = vld [vmem:[%s3102_s28 + $0x23c] ss:$20 sps:$4 sm:$0xff]  }
  0x4d   : > { %1176 = vmatmul.mubr.bf16.gmra.mxu0 %v2692_v46  ;;  %1272 = vmatmul.mubr.bf16.gmra.mxu1 %v2693_v47  ;;  %v2780_v46 = vld [vmem:[%s3102_s28 + $0x210] ss:$20 sps:$4 sm:$0xff]   ;;  %v2781_v47 = vld [vmem:[%s3102_s28 + $0x1c8] ss:$20 sps:$4 sm:$0xff]  }
  0x4e   : > { %2395 = vmatpush3.bf16.msra.mxu1 %v2696_v49  ;;  %1183 = vmatprep.mubr.bf16.mxu0 %v2699_v51  ;;  %v2784_v49 = vld [vmem:[%s3102_s28 + $0x1f0] ss:$20 sps:$4 sm:$0xff]   ;;  %v2786_v51 = vld [vmem:[%s3102_s28 + $0x218] ss:$20 sps:$4 sm:$0xff]  }
  0x4f   : > { %2396 = vmatprep.subr.bf16.mxu1 %v2697_v50  ;;  %1312 = vmatprep.mubr.bf16.mxu1 %v2703_v53  ;;  %v2785_v50 = vld [vmem:[%s3102_s28 + $0x238] ss:$20 sps:$4 sm:$0xff]   ;;  %v2789_v53 = vld [vmem:[%s3102_s28 + $0x240] ss:$20 sps:$4 sm:$0xff]  }
  0x50   : > { %2529 = vmatpush3.bf16.msra.mxu0 %v2725_v55  ;;  %v2791_v55 = vld [vmem:[%s3102_s28 + $0x268] ss:$20 sps:$4 sm:$0xff]  }
  0x51   : > { %2530 = vmatprep.subr.bf16.mxu0 %v2738_v60 }
  0x52   : > { %2397 = vmatpush3.bf16.msra.mxu1 %v2698_v54  ;;  %v2790_v54 = vld [vmem:[%s3102_s28 + $0x260] ss:$20 sps:$4 sm:$0xff]   ;;  %s193_s28 = sand.u32 1, %s2980_s10  }
  0x53   : > { %s2141_s18 = sshll.u32 %s193_s28, 8  ;;  %s3788_s12 = scalar_lea.sflag [#allocation4], %s193_s28 }
  0x54   : > { %2531 = vmatpush3.bf16.msra.mxu0 %v2738_v60  ;;  %s3712_s20 = scalar_lea.vmem [#allocation3], %s2141_s18 }
  0x55   : > { %1184 = vmatmul.mubr.bf16.gmra.mxu0 %v2704_v57  ;;  %1313 = vmatmul.mubr.bf16.vlgmr.msra.gmra.mxu1 %v2701_v56  ;;  %s2036_s24 = sshll.u32 %s3712_s20, 4  ;;  %s3782_s24 = int_to_ptr.vmem [resolvable:$true] %s2036_s24 }
  0x56   : > { %1191 = vmatprep.mubr.bf16.mxu0 %v2706_v58  ;;  %1320 = vmatprep.mubr.bf16.mxu1 %v2708_v59  ;;  %s2920_s29 = scalar_lea.vmem %s3782_s24, 4096  ;;  %p2927_p1 = scmp.lt.s32.totalorder %s3782_s24, %s2925_s3 }
  0x57   : > { %2532 = vmatprep.subr.bf16.mxu0 %v2745_v62  ;;  %p2921_p12 = scmp.ne.s32.totalorder %s3782_s24, %s2920_s29  ;;  %p2928_p2 = scmp.lt.s32.totalorder %s2926_s4, %s2920_s29 }
  0x58   : > { %2533 = vmatpush3.bf16.msra.mxu0 %v2745_v62 }
  0x59   : > { %p2922_p13 = pnand %p2921_p12, %p3056_p4  ;;  %p2929_p3 = por %p2928_p2, %p2927_p1 }
  0x5b   : > { %p2923_p0 = pneg %p2922_p13 }
  0x5d   : > { %1192 = vmatmul.mubr.bf16.gmra.mxu0 %v2710_v61  ;;  %1321 = vmatmul.mubr.bf16.gmra.mxu1 %v2711_v63  ;;  %p2930_p5 = pnand %p2929_p3, %p2923_p0 }
  0x5e   : > { %1199 = vmatprep.mubr.bf16.mxu0 %v2712_v0  ;;  %1328 = vmatprep.mubr.bf16.mxu1 %v2714_v1 }
  0x65   : > { %1200 = vmatmul.mubr.bf16.gmra.mxu0 %v2716_v2  ;;  %1329 = vmatmul.mubr.bf16.gmra.mxu1 %v2717_v3 }
  0x66   : > { %1207 = vmatprep.mubr.bf16.mxu0 %v2719_v4  ;;  %1336 = vmatprep.mubr.bf16.mxu1 %v2721_v5 }
  0x6d   : > { %1208 = vmatmul.mubr.bf16.gmra.mxu0 %v2723_v6  ;;  %1337 = vmatmul.mubr.bf16.gmra.mxu1 %v2724_v7 }
  0x6e   : > { %1215 = vmatprep.mubr.bf16.mxu0 %v2726_v8  ;;  %1344 = vmatprep.mubr.bf16.mxu1 %v2728_v9 }
  0x75   : > { %1216 = vmatmul.mubr.bf16.gmra.mxu0 %v2730_v10  ;;  %1345 = vmatmul.mubr.bf16.gmra.mxu1 %v2731_v11 }
  0x76   : > { %1223 = vmatprep.mubr.bf16.mxu0 %v2732_v12  ;;  %1352 = vmatprep.mubr.bf16.mxu1 %v2734_v13 }
  0x7d   : > { %1224 = vmatmul.mubr.bf16.gmra.mxu0 %v2736_v14  ;;  %1353 = vmatmul.mubr.bf16.gmra.mxu1 %v2737_v15 }
  0x7e   : > { %1231 = vmatprep.mubr.bf16.mxu0 %v2739_v16  ;;  %1360 = vmatprep.mubr.bf16.mxu1 %v2741_v17 }
  0x85   : > { %1232 = vmatmul.mubr.bf16.gmra.mxu0 %v2743_v18  ;;  %1361 = vmatmul.mubr.bf16.gmra.mxu1 %v2744_v19 }
  0x86   : > { %1239 = vmatprep.mubr.bf16.mxu0 %v2746_v20  ;;  %1368 = vmatprep.mubr.bf16.mxu1 %v2748_v21 }
  0x8d   : > { %1240 = vmatmul.mubr.bf16.gmra.mxu0 %v2750_v22  ;;  %1369 = vmatmul.mubr.bf16.gmra.mxu1 %v2751_v23 }
  0x8e   : > { %1376 = vmatprep.mubr.bf16.mxu1 %v2752_v24  ;;  %2534 = vmatprep.mubr.bf16.mxu0 %v2754_v25 }
  0x95   : > { %1377 = vmatmul.mubr.bf16.gmra.mxu1 %v2755_v26  ;;  %2535 = vmatmul.mubr.bf16.vlgmr.msra.gmra.mxu0 %v2756_v27 }
  0x96   : > { %1384 = vmatprep.mubr.bf16.mxu1 %v2757_v28  ;;  %2538 = vmatprep.mubr.bf16.mxu0 %v2759_v29 }
  0x9d   : > { %1385 = vmatmul.mubr.bf16.gmra.mxu1 %v2760_v30  ;;  %2539 = vmatmul.mubr.bf16.gmra.mxu0 %v2761_v31 }
  0x9e   : > { %1392 = vmatprep.mubr.bf16.mxu1 %v2762_v32  ;;  %2542 = vmatprep.mubr.bf16.mxu0 %v2764_v33 }
  0xa5   : > { %1393 = vmatmul.mubr.bf16.gmra.mxu1 %v2765_v34  ;;  %2543 = vmatmul.mubr.bf16.gmra.mxu0 %v2766_v35 }
  0xa6   : > { %1400 = vmatprep.mubr.bf16.mxu1 %v2767_v36  ;;  %2546 = vmatprep.mubr.bf16.mxu0 %v2769_v37 }
  0xad   : > { %1401 = vmatmul.mubr.bf16.gmra.mxu1 %v2770_v38  ;;  %2547 = vmatmul.mubr.bf16.gmra.mxu0 %v2771_v39 }
  0xae   : > { %1408 = vmatprep.mubr.bf16.mxu1 %v2772_v40  ;;  %2550 = vmatprep.mubr.bf16.mxu0 %v2774_v41 }
  0xb5   : > { %1409 = vmatmul.mubr.bf16.gmra.mxu1 %v2775_v42  ;;  %2551 = vmatmul.mubr.bf16.gmra.mxu0 %v2776_v43 }
  0xb6   : > { %1416 = vmatprep.mubr.bf16.mxu1 %v2777_v44  ;;  %2554 = vmatprep.mubr.bf16.mxu0 %v2779_v45 }
  0xbd   : > { %1417 = vmatmul.mubr.bf16.gmra.mxu1 %v2780_v46  ;;  %2555 = vmatmul.mubr.bf16.gmra.mxu0 %v2781_v47 }
  0xbe   : > { %1424 = vmatprep.mubr.bf16.mxu1 %v2782_v48  ;;  %2558 = vmatprep.mubr.bf16.mxu0 %v2784_v49 }
  0xc5   : > { %1425 = vmatmul.mubr.bf16.gmra.mxu1 %v2785_v50  ;;  %2559 = vmatmul.mubr.bf16.gmra.mxu0 %v2786_v51 }
  0xc6   : > { %1432 = vmatprep.mubr.bf16.mxu1 %v2787_v52  ;;  %2562 = vmatprep.mubr.bf16.mxu0 %v2789_v53 }
  0xcd   : > { %1433 = vmatmul.mubr.bf16.gmra.mxu1 %v2790_v54  ;;  %2563 = vmatmul.mubr.bf16.gmra.mxu0 %v2791_v55 }
  0xf5   : > { %v2286_v56 = vpop.f32.mrf.mxu0  ;;  %v2358_v57 = vpop.f32.mrf.mxu1 }
  0xf7   : > { %v2287_v58 = vpop.f32.mrf.mxu0  ;;  %v2359_v59 = vpop.f32.mrf.mxu1 }
  0xf8   : > { %v3277_v60 = vadd.f32 %v2287_v58, %v2286_v56  ;;  %v3279_v61 = vadd.f32 %v2359_v59, %v2358_v57 }
  0xf9   : > { %v2289_v62 = vpop.f32.mrf.mxu0  ;;  %v2361_v63 = vpop.f32.mrf.mxu1 }
  0xfa   : > { %3838 = vst [vmem:[#allocation6_spill] sm:$0xff] %v3279_v61 }
  0xfb   : > { %v2290_v0 = vpop.f32.mrf.mxu0  ;;  %v2362_v1 = vpop.f32.mrf.mxu1 }
  0xfc   : > { %v3281_v2 = vadd.f32 %v2290_v0, %v2289_v62  ;;  %v3283_v3 = vadd.f32 %v2362_v1, %v2361_v63 }
  0xfd   : > { %v2292_v4 = vpop.f32.mrf.mxu0  ;;  %v2364_v5 = vpop.f32.mrf.mxu1 }
  0xfe   : > { %3839 = vst [vmem:[#allocation7_spill] sm:$0xff] %v3283_v3 }
  0xff   : > { %v2293_v6 = vpop.f32.mrf.mxu0  ;;  %v2365_v7 = vpop.f32.mrf.mxu1 }
 0x100   : > { %v3285_v8 = vadd.f32 %v2293_v6, %v2292_v4  ;;  %v3287_v9 = vadd.f32 %v2365_v7, %v2364_v5 }
 0x101   : > { %v2295_v10 = vpop.f32.mrf.mxu0  ;;  %v2367_v11 = vpop.f32.mrf.mxu1 }
 0x102   : > { %3840 = vst [vmem:[#allocation8_spill] sm:$0xff] %v3287_v9 }
 0x103   : > { %v2296_v12 = vpop.f32.mrf.mxu0  ;;  %v2368_v13 = vpop.f32.mrf.mxu1 }
 0x104   : > { %v3289_v14 = vadd.f32 %v2296_v12, %v2295_v10  ;;  %v3291_v15 = vadd.f32 %v2368_v13, %v2367_v11 }
 0x105   : > { %v2298_v16 = vpop.f32.mrf.mxu0  ;;  %v2370_v17 = vpop.f32.mrf.mxu1 }
 0x106   : > { %3841 = vst [vmem:[#allocation9_spill] sm:$0xff] %v3291_v15 }
 0x107   : > { %v2299_v18 = vpop.f32.mrf.mxu0  ;;  %v2371_v19 = vpop.f32.mrf.mxu1 }
 0x108   : > { %v3293_v20 = vadd.f32 %v2299_v18, %v2298_v16  ;;  %v3295_v21 = vadd.f32 %v2371_v19, %v2370_v17 }
 0x109   : > { %v2301_v22 = vpop.f32.mrf.mxu0  ;;  %v2373_v23 = vpop.f32.mrf.mxu1 }
 0x10a   : > { %3842 = vst [vmem:[#allocation10_spill] sm:$0xff] %v3295_v21 }
 0x10b   : > { %v2302_v24 = vpop.f32.mrf.mxu0  ;;  %v2374_v25 = vpop.f32.mrf.mxu1 }
 0x10c   : > { %v3297_v26 = vadd.f32 %v2302_v24, %v2301_v22  ;;  %v3299_v27 = vadd.f32 %v2374_v25, %v2373_v23 }
 0x10d   : > { %v2304_v28 = vpop.f32.mrf.mxu0  ;;  %v2376_v29 = vpop.f32.mrf.mxu1 }
 0x10e   : > { %3843 = vst [vmem:[#allocation11_spill] sm:$0xff] %v3299_v27 }
 0x10f   : > { %v2305_v30 = vpop.f32.mrf.mxu0  ;;  %v2377_v31 = vpop.f32.mrf.mxu1 }
 0x110   : > { %v3301_v32 = vadd.f32 %v2305_v30, %v2304_v28  ;;  %v3303_v33 = vadd.f32 %v2377_v31, %v2376_v29 }
 0x111   : > { %v2307_v34 = vpop.f32.mrf.mxu0  ;;  %v2379_v35 = vpop.f32.mrf.mxu1 }
 0x112   : > { %3844 = vst [vmem:[#allocation12_spill] sm:$0xff] %v3303_v33 }
 0x113   : > { %v2308_v36 = vpop.f32.mrf.mxu0  ;;  %v2380_v37 = vpop.f32.mrf.mxu1 }
 0x114   : > { %v3305_v38 = vadd.f32 %v2308_v36, %v2307_v34  ;;  %v3307_v39 = vadd.f32 %v2380_v37, %v2379_v35 }
 0x115   : > { %v2310_v40 = vpop.f32.mrf.mxu0  ;;  %v3309_v41 = vpop.f32.mrf.mxu1 }
 0x116   : > { %3845 = vst [vmem:[#allocation13_spill] sm:$0xff] %v3307_v39 }
 0x117   : > { %v2311_v42 = vpop.f32.mrf.mxu0  ;;  %v3311_v43 = vpop.f32.mrf.mxu1 }
 0x118   : > { %v3313_v44 = vadd.f32 %v2311_v42, %v2310_v40 }
 0x119   : > { %v2313_v45 = vpop.f32.mrf.mxu0  ;;  %v3315_v46 = vpop.f32.mrf.mxu1 }
 0x11b   : > { %v2314_v47 = vpop.f32.mrf.mxu0  ;;  %v3317_v48 = vpop.f32.mrf.mxu1 }
 0x11c   : > { %v3319_v49 = vadd.f32 %v2314_v47, %v2313_v45 }
 0x11d   : > { %v2316_v50 = vpop.f32.mrf.mxu0  ;;  %v2404_v51 = vpop.f32.mrf.mxu1 }
 0x11f   : > { %v2317_v52 = vpop.f32.mrf.mxu0  ;;  %v2405_v53 = vpop.f32.mrf.mxu1 }
 0x120   : > { %v3321_v54 = vadd.f32 %v2317_v52, %v2316_v50  ;;  %v2406_v61 = vadd.f32 %v2405_v53, %v2404_v51  ;;  %v2403_v51 = vadd.f32 %v3317_v48, %v3315_v46 }
 0x121   : > { %v2319_v55 = vpop.f32.mrf.mxu0  ;;  %v2407_v56 = vpop.f32.mrf.mxu1 }
 0x123   : > { %v2320_v57 = vpop.f32.mrf.mxu0  ;;  %v2408_v58 = vpop.f32.mrf.mxu1 }
 0x124   : > { %v3323_v59 = vadd.f32 %v2320_v57, %v2319_v55 }
 0x125   : > { %v2322_v62 = vpop.f32.mrf.mxu0  ;;  %v3325_v63 = vpop.f32.mrf.mxu1 }
 0x127   : > { %v2323_v0 = vpop.f32.mrf.mxu0  ;;  %v3327_v1 = vpop.f32.mrf.mxu1 }
 0x128   : > { %v3329_v4 = vadd.f32 %v2323_v0, %v2322_v62 }
 0x129   : > { %v2325_v5 = vpop.f32.mrf.mxu0  ;;  %v3331_v6 = vpop.f32.mrf.mxu1 }
 0x12b   : > { %v2326_v7 = vpop.f32.mrf.mxu0  ;;  %v3333_v10 = vpop.f32.mrf.mxu1 }
 0x12c   : > { %v3335_v11 = vadd.f32 %v2326_v7, %v2325_v5 }
 0x12d   : > { %v3337_v12 = vpop.f32.mrf.mxu0  ;;  %v2416_v13 = vpop.f32.mrf.mxu1 }
 0x12f   : > { %v3339_v16 = vpop.f32.mrf.mxu0  ;;  %v2417_v17 = vpop.f32.mrf.mxu1 }
 0x131   : > { %v3341_v18 = vpop.f32.mrf.mxu0  ;;  %v2419_v19 = vpop.f32.mrf.mxu1 }
 0x133   : > { %v3343_v22 = vpop.f32.mrf.mxu0  ;;  %v2420_v23 = vpop.f32.mrf.mxu1 }
 0x134   : > { %v2421_v46 = vadd.f32 %v2420_v23, %v2419_v19 }
 0x135   : > { %v2334_v24 = vpop.f32.mrf.mxu0  ;;  %v3345_v25 = vpop.f32.mrf.mxu1 }
 0x136   : > { %v1342_v19 = vadd.f32 %v2421_v46, %v3305_v38 }
 0x137   : > { %v2335_v28 = vpop.f32.mrf.mxu0  ;;  %v3347_v29 = vpop.f32.mrf.mxu1 }
 0x138   : > { %v3349_v30 = vadd.f32 %v2335_v28, %v2334_v24 }
 0x139   : > { %v3351_v31 = vpop.f32.mrf.mxu0  ;;  %v3353_v34 = vpop.f32.mrf.mxu1 }
 0x13a   : > { %3846 = vst [vmem:[#allocation14_spill] sm:$0xff] %v3349_v30 }
 0x13b   : > { %v3355_v35 = vpop.f32.mrf.mxu0  ;;  %v3357_v36 = vpop.f32.mrf.mxu1 }
 0x13c   : > { %3847 = vst [vmem:[#allocation15_spill] sm:$0xff] %v3355_v35 }
 0x13d   : > { %v3359_v37 = vpop.f32.mrf.mxu0  ;;  %v2428_v40 = vpop.f32.mrf.mxu1 }
 0x13f   : > { %v3361_v42 = vpop.f32.mrf.mxu0  ;;  %v2429_v45 = vpop.f32.mrf.mxu1 }
 0x141   : > { %v3363_v47 = vpop.f32.mrf.mxu0  ;;  %v2431_v50 = vpop.f32.mrf.mxu1 }
 0x143   : > { %v3365_v52 = vpop.f32.mrf.mxu0  ;;  %v2432_v55 = vpop.f32.mrf.mxu1 }
 0x145   : > { %v3367_v57 = vpop.f32.mrf.mxu0  ;;  %v3369_v62 = vpop.f32.mrf.mxu1 }
 0x146   : > { %3848 = vst [vmem:[#allocation16_spill] sm:$0xff] %v3367_v57  ;;  %v2409_v57 = vadd.f32 %v2408_v58, %v2407_v56  ;;  %v2418_v58 = vadd.f32 %v2417_v17, %v2416_v13 }
 0x147   : > { %v3371_v0 = vpop.f32.mrf.mxu0  ;;  %v3373_v5 = vpop.f32.mrf.mxu1 }
 0x148   : > { %3849 = vst [vmem:[#allocation17_spill] sm:$0xff] %v3371_v0  ;;  %v1326_v56 = vadd.f32 %v2409_v57, %v3289_v14  ;;  %v2412_v57 = vadd.f32 %v3327_v1, %v3325_v63  ;;  %v1339_v13 = vadd.f32 %v2418_v58, %v3301_v32  ;;  %v2433_v1 = vadd.f32 %v2432_v55, %v2431_v50 }
 0x149   : > { %v3375_v7 = vpop.f32.mrf.mxu0  ;;  %v3377_v24 = vpop.f32.mrf.mxu1 }
 0x14a   : > { %3850 = vst [vmem:[#allocation18_spill] sm:$0xff] %v3375_v7  ;;  %v2400_v7 = vadd.f32 %v3311_v43, %v3309_v41  ;;  %v1358_v46 = vadd.f32 %v2433_v1, %v3323_v59 }
 0x14b   : > { %v3379_v28 = vpop.f32.mrf.mxu0  ;;  %v3381_v39 = vpop.f32.mrf.mxu1 }
 0x14c   : > { %3851 = vst [vmem:[#allocation19_spill] sm:$0xff] %v3379_v28 }
 0x14d   : > { %v3383_v27 = vpop.f32.mrf.mxu0  ;;  %v3385_v33 = vpop.f32.mrf.mxu1 }
 0x14e   : > { %3852 = vst [vmem:[#allocation20_spill] sm:$0xff] %v3383_v27  ;;  %v1323_v27 = vadd.f32 %v2406_v61, %v3285_v8 }
 0x14f   : > { %v3387_v21 = vpop.f32.mrf.mxu0  ;;  %v3389_v3 = vpop.f32.mrf.mxu1 }
 0x150   : > { %3853 = vst [vmem:[#allocation21_spill] sm:$0xff] %v3387_v21 }
 0x151   : > { %v3391_v15 = vpop.f32.mrf.mxu0  ;;  %v3393_v9 = vpop.f32.mrf.mxu1 }
 0x152   : > { %3854 = vst [vmem:[#allocation22_spill] sm:$0xff] %v3391_v15  ;;  %v1315_v15 = vadd.f32 %v2400_v7, %v3277_v60 }
 0x153   : > { %v3397_v0 = vpop.f32.mrf.mxu0  ;;  %v3399_v28 = vpop.f32.mrf.mxu1 }
 0x154   : > { %3855 = vst [vmem:[#allocation23_spill] sm:$0xff] %v3397_v0  ;;  %v2445_v59 = vadd.f32 %v3399_v28, %v3393_v9 }
 0x155   : > { %v3402_v30 = vpop.f32.mrf.mxu1  ;;  %v2536_v21 = vpop.f32.mrf.mxu0 }
 0x156   : > { %v3406_v53 = vadd.f32 %v2536_v21, %v1323_v27  ;;  %v1318_v21 = vadd.f32 %v2403_v51, %v3281_v2  ;;  %v2415_v2 = vadd.f32 %v3333_v10, %v3331_v6 }
 0x157   : > { %v3409_v35 = vpop.f32.mrf.mxu1  ;;  %v1475_v41 = vpop.f32.mrf.mxu0 }
 0x158   : > { %v3411_v43 = vadd.f32 %v1475_v41, %v1315_v15  ;;  %1705 = vmax.xlane.f32.xlu1 %v3406_v53  ;;  %v1334_v6 = vadd.f32 %v2415_v2, %v3297_v26  ;;  %v2427_v26 = vadd.f32 %v3357_v36, %v3353_v34  ;;  %v2330_v36 = vadd.f32 %v3339_v16, %v3337_v12 }
 0x159   : > { %v3415_v61 = vpop.f32.mrf.mxu1  ;;  %v2537_v8 = vpop.f32.mrf.mxu0 }
 0x15a   : > { %v3417_v0 = vadd.f32 %v2537_v8, %v1326_v56  ;;  %1701 = vmax.xlane.f32.xlu0 %v3411_v43  ;;  %v2430_v56 = vadd.f32 %v2429_v45, %v2428_v40  ;;  %v1331_v8 = vadd.f32 %v2412_v57, %v3293_v20  ;;  %v2424_v40 = vadd.f32 %v3347_v29, %v3345_v25 }
 0x15b   : > { %v3421_v60 = vpop.f32.mrf.mxu1  ;;  %v1478_v27 = vpop.f32.mrf.mxu0  ;;  %v1350_v2 = vadd.f32 %v2427_v26, %v3319_v49  ;;  %v2439_v49 = vadd.f32 %v3381_v39, %v3377_v24 }
 0x15c   : > { %v3423_v15 = vadd.f32 %v1478_v27, %v1318_v21  ;;  %1707 = vmax.xlane.f32.xlu1 %v3417_v0  ;;  %v1355_v45 = vadd.f32 %v2430_v56, %v3321_v54  ;;  %v2442_v54 = vadd.f32 %v3389_v3, %v3385_v33  ;;  %v1347_v29 = vadd.f32 %v2424_v40, %v3313_v44 }
 0x15d   : > { %v2452_v48 = vpop.f32.mrf.mxu1  ;;  %v2540_v14 = vpop.f32.mrf.mxu0  ;;  %v2333_v44 = vadd.f32 %v3343_v22, %v3341_v18 }
 0x15e   : > { %1703 = vmax.xlane.f32.xlu0 %v3423_v15  ;;  %v3432_v51 = vadd.f32 %v2540_v14, %v1339_v13  ;;  %v1371_v12 = vadd.f32 %v2442_v54, %v2330_v36 }
 0x15f   : > { %v2453_v17 = vpop.f32.mrf.mxu1  ;;  %v1491_v7 = vpop.f32.mrf.mxu0  ;;  %v1374_v56 = vadd.f32 %v2445_v59, %v2333_v44 }
 0x160   : > { %v3439_v58 = vadd.f32 %v1491_v7, %v1331_v8  ;;  %v2454_v22 = vadd.f32 %v2453_v17, %v2452_v48  ;;  %v2448_v17 = vadd.f32 %v3409_v35, %v3402_v30 }
 0x161   : > { %v2455_v23 = vpop.f32.mrf.mxu1  ;;  %v2541_v41 = vpop.f32.mrf.mxu0 }
 0x162   : > { %v3436_v21 = vadd.f32 %v2541_v41, %v1342_v19  ;;  %1713 = vmax.xlane.f32.xlu0 %v3432_v51  ;;  %v2436_v19 = vadd.f32 %v3373_v5, %v3369_v62 }
 0x163   : > { %v2456_v32 = vpop.f32.mrf.mxu1  ;;  %v1494_v63 = vpop.f32.mrf.mxu0 }
 0x164   : > { %1715 = vmax.xlane.f32.xlu1 %v3436_v21  ;;  %v3447_v20 = vadd.f32 %v1494_v63, %v1334_v6  ;;  %v1363_v62 = vadd.f32 %v2436_v19, %v3329_v4  ;;  %v2342_v6 = vadd.f32 %v3361_v42, %v3359_v37  ;;  %v2457_v39 = vadd.f32 %v2456_v32, %v2455_v23  ;;  %v3861_v19 = vld [vmem:[#allocation23_spill] sm:$0xff] }
 0x165   : > { %v3443_v10 = vpop.f32.mrf.mxu1  ;;  %v2544_v38 = vpop.f32.mrf.mxu0  ;;  %v2345_v4 = vadd.f32 %v3365_v52, %v3363_v47  ;;  %v3856_v52 = vld [vmem:[#allocation15_spill] sm:$0xff] }
 0x166   : > { %1709 = vmax.xlane.f32.xlu0 %v3439_v58  ;;  %v3455_v55 = vadd.f32 %v2544_v38, %v1355_v45  ;;  %v1366_v38 = vadd.f32 %v2439_v49, %v3335_v11  ;;  %v2451_v11 = vadd.f32 %v3421_v60, %v3415_v61  ;;  %v2339_v30 = vadd.f32 %v3856_v52, %v3351_v31  ;;  %v3858_v61 = vld [vmem:[#allocation20_spill] sm:$0xff]  ;;  %v3859_v60 = vld [vmem:[#allocation21_spill] sm:$0xff] }
 0x167   : > { %v3451_v27 = vpop.f32.mrf.mxu1  ;;  %v1507_v50 = vpop.f32.mrf.mxu0  ;;  %v1390_v32 = vadd.f32 %v2457_v39, %v2345_v4  ;;  %v2354_v36 = vadd.f32 %v3859_v60, %v3858_v61 }
 0x168   : > { %1711 = vmax.xlane.f32.xlu1 %v3447_v20  ;;  %v3473_v7 = vadd.f32 %v1507_v50, %v1347_v29  ;;  %v1387_v50 = vadd.f32 %v2454_v22, %v2342_v6  ;;  %v3863_v22 = vld [vmem:[#allocation17_spill] sm:$0xff] }
 0x169   : > { %v3459_v14 = vpop.f32.mrf.mxu1  ;;  %v2545_v25 = vpop.f32.mrf.mxu0 }
 0x16a   : > { %v3464_v57 = vadd.f32 %v2545_v25, %v1358_v46  ;;  %1721 = vmax.xlane.f32.xlu0 %v3455_v55  ;;  %v3857_v46 = vld [vmem:[#allocation14_spill] sm:$0xff] }
 0x16b   : > { %v3467_v13 = vpop.f32.mrf.mxu1  ;;  %v1510_v34 = vpop.f32.mrf.mxu0  ;;  %v1379_v25 = vadd.f32 %v2448_v17, %v3857_v46  ;;  %v3866_v46 = vld [vmem:[#allocation8_spill] sm:$0xff] }
 0x16c   : > { %1723 = vmax.xlane.f32.xlu1 %v3464_v57  ;;  %v3481_v41 = vadd.f32 %v1510_v34, %v1350_v2 }
 0x16d   : > { %v2464_v3 = vpop.f32.mrf.mxu1  ;;  %v2548_v33 = vpop.f32.mrf.mxu0 }
 0x16e   : > { %1717 = vmax.xlane.f32.xlu0 %v3473_v7  ;;  %v3486_v28 = vadd.f32 %v2548_v33, %v1371_v12  ;;  %v1382_v33 = vadd.f32 %v2451_v11, %v2339_v30 }
 0x16f   : > { %v2465_v9 = vpop.f32.mrf.mxu1  ;;  %v1523_v16 = vpop.f32.mrf.mxu0 }
 0x170   : > { %1719 = vmax.xlane.f32.xlu1 %v3481_v41  ;;  %v3495_v24 = vadd.f32 %v1523_v16, %v1363_v62  ;;  %v2466_v35 = vadd.f32 %v2465_v9, %v2464_v3  ;;  %v3860_v3 = vld [vmem:[#allocation22_spill] sm:$0xff]  ;;  %v2460_v9 = vadd.f32 %v3451_v27, %v3443_v10 }
 0x171   : > { %v2467_v8 = vpop.f32.mrf.mxu1  ;;  %v2549_v18 = vpop.f32.mrf.mxu0  ;;  %v2357_v12 = vadd.f32 %v3861_v19, %v3860_v3  ;;  %v3864_v27 = vld [vmem:[#allocation18_spill] sm:$0xff] }
 0x172   : > { %v3490_v5 = vadd.f32 %v2549_v18, %v1374_v56  ;;  %1729 = vmax.xlane.f32.xlu0 %v3486_v28  ;;  %v1403_v49 = vadd.f32 %v2466_v35, %v2354_v36  ;;  %v3862_v18 = vld [vmem:[#allocation16_spill] sm:$0xff]  ;;  %v3868_v19 = vld [vmem:[#allocation6_spill] sm:$0xff] }
 0x173   : > { %v2468_v63 = vpop.f32.mrf.mxu1  ;;  %v1526_v1 = vpop.f32.mrf.mxu0  ;;  %v2348_v62 = vadd.f32 %v3863_v22, %v3862_v18 }
 0x174   : > { %1731 = vmax.xlane.f32.xlu1 %v3490_v5  ;;  %v3503_v45 = vadd.f32 %v1526_v1, %v1366_v38  ;;  %v2469_v59 = vadd.f32 %v2468_v63, %v2467_v8  ;;  %v2463_v63 = vadd.f32 %v3467_v13, %v3459_v14  ;;  %v3865_v38 = vld [vmem:[#allocation19_spill] sm:$0xff] }
 0x175   : > { %v2470_v40 = vpop.f32.mrf.mxu1  ;;  %v2552_v48 = vpop.f32.mrf.mxu0  ;;  %v1395_v17 = vadd.f32 %v2460_v9, %v2348_v62  ;;  %v3870_v62 = vld [vmem:[#allocation10_spill] sm:$0xff] }
 0x176   : > { %1725 = vmax.xlane.f32.xlu0 %v3495_v24  ;;  %v3508_v23 = vadd.f32 %v2552_v48, %v1387_v50  ;;  %v1406_v6 = vadd.f32 %v2469_v59, %v2357_v12  ;;  %v2351_v48 = vadd.f32 %v3865_v38, %v3864_v27  ;;  %v3867_v59 = vld [vmem:[#allocation9_spill] sm:$0xff] }
 0x177   : > { %v2471_v37 = vpop.f32.mrf.mxu1  ;;  %v1539_v42 = vpop.f32.mrf.mxu0 }
 0x178   : > { %1727 = vmax.xlane.f32.xlu1 %v3503_v45  ;;  %v3519_v2 = vadd.f32 %v1539_v42, %v1379_v25  ;;  %v1398_v13 = vadd.f32 %v2463_v63, %v2351_v48  ;;  %v2472_v30 = vadd.f32 %v2471_v37, %v2470_v40 }
 0x179   : > { %v2473_v26 = vpop.f32.mrf.mxu1  ;;  %v2553_v47 = vpop.f32.mrf.mxu0 }
 0x17a   : > { %v3514_v54 = vadd.f32 %v2553_v47, %v1390_v32  ;;  %1737 = vmax.xlane.f32.xlu0 %v3508_v23  ;;  %v1411_v40 = vadd.f32 %v2472_v30, %v3868_v19 }
 0x17b   : > { %v2474_v29 = vpop.f32.mrf.mxu1  ;;  %v1542_v34 = vpop.f32.mrf.mxu0 }
 0x17c   : > { %1739 = vmax.xlane.f32.xlu1 %v3514_v54  ;;  %v3526_v16 = vadd.f32 %v1542_v34, %v1382_v33  ;;  %v2475_v60 = vadd.f32 %v2474_v29, %v2473_v26  ;;  %v3869_v26 = vld [vmem:[#allocation7_spill] sm:$0xff] }
 0x17d   : > { %v2476_v44 = vpop.f32.mrf.mxu1  ;;  %v2556_v31 = vpop.f32.mrf.mxu0 }
 0x17e   : > { %1733 = vmax.xlane.f32.xlu0 %v3519_v2  ;;  %v3533_v1 = vadd.f32 %v2556_v31, %v1403_v49  ;;  %v1414_v29 = vadd.f32 %v2475_v60, %v3869_v26 }
 0x17f   : > { %v2477_v56 = vpop.f32.mrf.mxu1  ;;  %v1555_v8 = vpop.f32.mrf.mxu0 }
 0x180   : > { %1735 = vmax.xlane.f32.xlu1 %v3526_v16  ;;  %v2478_v4 = vadd.f32 %v2477_v56, %v2476_v44  ;;  %v3541_v32 = vadd.f32 %v1555_v8, %v1395_v17 }
 0x181   : > { %v2479_v39 = vpop.f32.mrf.mxu1  ;;  %v2557_v10 = vpop.f32.mrf.mxu0 }
 0x182   : > { %v3538_v50 = vadd.f32 %v2557_v10, %v1406_v6  ;;  %1745 = vmax.xlane.f32.xlu0 %v3533_v1  ;;  %v1419_v25 = vadd.f32 %v2478_v4, %v3866_v46  ;;  %v3871_v4 = vld [vmem:[#allocation12_spill] sm:$0xff]  ;;  %v3873_v46 = vld [vmem:[#allocation13_spill] sm:$0xff] }
 0x183   : > { %v2480_v42 = vpop.f32.mrf.mxu1  ;;  %v1558_v11 = vpop.f32.mrf.mxu0 }
 0x184   : > { %v2481_v14 = vadd.f32 %v2480_v42, %v2479_v39  ;;  %1747 = vmax.xlane.f32.xlu1 %v3538_v50  ;;  %v3544_v35 = vadd.f32 %v1558_v11, %v1398_v13  ;;  %v3872_v42 = vld [vmem:[#allocation11_spill] sm:$0xff] }
 0x185   : > { %v2482_v47 = vpop.f32.mrf.mxu1  ;;  %v2560_v52 = vpop.f32.mrf.mxu0 }
 0x186   : > { %1741 = vmax.xlane.f32.xlu0 %v3541_v32  ;;  %v3548_v36 = vadd.f32 %v2560_v52, %v1419_v25  ;;  %v1422_v33 = vadd.f32 %v2481_v14, %v3867_v59 }
 0x187   : > { %v2483_v34 = vpop.f32.mrf.mxu1  ;;  %v1571_v61 = vpop.f32.mrf.mxu0 }
 0x188   : > { %1743 = vmax.xlane.f32.xlu1 %v3544_v35  ;;  %v2484_v3 = vadd.f32 %v2483_v34, %v2482_v47  ;;  %v3556_v49 = vadd.f32 %v1571_v61, %v1411_v40 }
 0x189   : > { %v2485_v44 = vpop.f32.mrf.mxu1  ;;  %v2561_v31 = vpop.f32.mrf.mxu0 }
 0x18a   : > { %v3553_v37 = vadd.f32 %v2561_v31, %v1422_v33  ;;  %1753 = vmax.xlane.f32.xlu0 %v3548_v36  ;;  %v1427_v63 = vadd.f32 %v2484_v3, %v3870_v62 }
 0x18b   : > { %v2486_v12 = vpop.f32.mrf.mxu1  ;;  %v1574_v9 = vpop.f32.mrf.mxu0 }
 0x18c   : > { %1755 = vmax.xlane.f32.xlu1 %v3553_v37  ;;  %v2487_v18 = vadd.f32 %v2486_v12, %v2485_v44  ;;  %v3560_v22 = vadd.f32 %v1574_v9, %v1414_v29 }
 0x18d   : > { %v2488_v56 = vpop.f32.mrf.mxu1  ;;  %v2564_v8 = vpop.f32.mrf.mxu0 }
 0x18e   : > { %1749 = vmax.xlane.f32.xlu0 %v3556_v49  ;;  %v1430_v11 = vadd.f32 %v2487_v18, %v3872_v42 }
 0x18f   : > { %v2489_v6 = vpop.f32.mrf.mxu1  ;;  %v1587_v39 = vpop.f32.mrf.mxu0 }
 0x190   : > { %v2490_v10 = vadd.f32 %v2489_v6, %v2488_v56  ;;  %v3564_v27 = vadd.f32 %v1587_v39, %v1427_v63  ;;  %1751 = vmax.xlane.f32.xlu1 %v3560_v22 }
 0x191   : > { %v2491_v38 = vpop.f32.mrf.mxu1  ;;  %v2565_v48 = vpop.f32.mrf.mxu0 }
 0x192   : > { %v1435_v17 = vadd.f32 %v2490_v10, %v3871_v4  ;;  %1757 = vmax.xlane.f32.xlu0 %v3564_v27 }
 0x193   : > { %v2492_v14 = vpop.f32.mrf.mxu1  ;;  %v1590_v13 = vpop.f32.mrf.mxu0 }
 0x194   : > { %v2493_v47 = vadd.f32 %v2492_v14, %v2491_v38  ;;  %v3570_v52 = vadd.f32 %v1590_v13, %v1430_v11  ;;  %v3572_v30 = vadd.f32 %v2564_v8, %v1435_v17 }
 0x196   : > { %v1438_v25 = vadd.f32 %v2493_v47, %v3873_v46  ;;  %1759 = vmax.xlane.f32.xlu1 %v3570_v52  ;;  %1761 = vmax.xlane.f32.xlu0 %v3572_v30 }
 0x198   : > { %v3577_v34 = vadd.f32 %v2565_v48, %v1438_v25 }
 0x19a   : > { %1763 = vmax.xlane.f32.xlu1 %v3577_v34 }
 0x1e1   : > { %v1706_v61 = vpop.xlane.xlu1 %1705 }
 0x1e2   : > { %v1767_v60 = vsub.f32 %v3406_v53, %v1706_v61 }
 0x1e3   : > { %v1702_v59 = vpop.xlane.xlu0 %1701 }
 0x1e4   : > { %v1801_v33 = vmul.f32 1.442695, %v1767_v60  ;;  %v1765_v44 = vsub.f32 %v3411_v43, %v1702_v59 }
 0x1e5   : > { %v1708_v31 = vpop.xlane.xlu1 %1707 }
 0x1e6   : > { %2792 = vpow2.f32 %v1801_v33  ;;  %v1797_v3 = vmul.f32 1.442695, %v1765_v44  ;;  %v1768_v19 = vsub.f32 %v3417_v0, %v1708_v31 }
 0x1e7   : > { %v1704_v40 = vpop.xlane.xlu0 %1703 }
 0x1e8   : > { %v1803_v12 = vmul.f32 1.442695, %v1768_v19  ;;  %v1766_v9 = vsub.f32 %v3423_v15, %v1704_v40  ;;  %2794 = vpow2.f32 %v1797_v3 }
 0x1ea   : > { %2796 = vpow2.f32 %v1803_v12  ;;  %v1799_v26 = vmul.f32 1.442695, %v1766_v9 }
 0x1eb   : > { %v1714_v29 = vpop.xlane.xlu0 %1713 }
 0x1ec   : > { %v1771_v56 = vsub.f32 %v3432_v51, %v1714_v29  ;;  %2798 = vpow2.f32 %v1799_v26 }
 0x1ed   : > { %v1716_v53 = vpop.xlane.xlu1 %1715 }
 0x1ee   : > { %v1809_v8 = vmul.f32 1.442695, %v1771_v56  ;;  %v1772_v43 = vsub.f32 %v3436_v21, %v1716_v53 }
 0x1ef   : > { %v1710_v18 = vpop.xlane.xlu0 %1709 }
 0x1f0   : > { %2800 = vpow2.f32 %v1809_v8  ;;  %v1811_v62 = vmul.f32 1.442695, %v1772_v43  ;;  %v1769_v0 = vsub.f32 %v3439_v58, %v1710_v18 }
 0x1f1   : > { %v1712_v63 = vpop.xlane.xlu1 %1711 }
 0x1f2   : > { %2802 = vpow2.f32 %v1811_v62  ;;  %v1805_v6 = vmul.f32 1.442695, %v1769_v0  ;;  %v1770_v15 = vsub.f32 %v3447_v20, %v1712_v63 }
 0x1f3   : > { %v3588_v39 = vpop.eup %2792  ;;  %v1722_v10 = vpop.xlane.xlu0 %1721 }
 0x1f4   : > { %2804 = vpow2.f32 %v1805_v6  ;;  %v1807_v51 = vmul.f32 1.442695, %v1770_v15  ;;  %v1775_v38 = vsub.f32 %v3455_v55, %v1722_v10  ;;  %1865 = vadd.xlane.f32.xlu0 %v3588_v39 }
 0x1f5   : > { %v1724_v21 = vpop.xlane.xlu1 %1723  ;;  %v3592_v48 = vpop.eup %2794 }
 0x1f6   : > { %2806 = vpow2.f32 %v1807_v51  ;;  %v1817_v4 = vmul.f32 1.442695, %v1775_v38  ;;  %v1776_v58 = vsub.f32 %v3464_v57, %v1724_v21 }
 0x1f7   : > { %v3595_v17 = vpop.eup %2796  ;;  %v1718_v42 = vpop.xlane.xlu0 %1717 }
 0x1f8   : > { %2808 = vpow2.f32 %v1817_v4  ;;  %v1819_v20 = vmul.f32 1.442695, %v1776_v58  ;;  %v1773_v11 = vsub.f32 %v3473_v7, %v1718_v42  ;;  %1867 = vadd.xlane.f32.xlu1 %v3595_v17  ;;  %1861 = vadd.xlane.f32.xlu0 %v3592_v48 }
 0x1f9   : > { %v1720_v55 = vpop.xlane.xlu1 %1719  ;;  %v3601_v47 = vpop.eup %2798 }
 0x1fa   : > { %2810 = vpow2.f32 %v1819_v20  ;;  %v1813_v14 = vmul.f32 1.442695, %v1773_v11  ;;  %v1774_v13 = vsub.f32 %v3481_v41, %v1720_v55 }
 0x1fb   : > { %v1730_v46 = vpop.xlane.xlu0 %1729 }
 0x1fc   : > { %2812 = vpow2.f32 %v1813_v14  ;;  %v1815_v57 = vmul.f32 1.442695, %v1774_v13  ;;  %v1779_v25 = vsub.f32 %v3486_v28, %v1730_v46  ;;  %1863 = vadd.xlane.f32.xlu1 %v3601_v47 }
 0x1fd   : > { %v3605_v61 = vpop.eup %2800  ;;  %v1732_v7 = vpop.xlane.xlu1 %1731 }
 0x1fe   : > { %2814 = vpow2.f32 %v1815_v57  ;;  %v1825_v60 = vmul.f32 1.442695, %v1779_v25  ;;  %v1780_v59 = vsub.f32 %v3490_v5, %v1732_v7  ;;  %1873 = vadd.xlane.f32.xlu0 %v3605_v61 }
 0x1ff   : > { %v3609_v33 = vpop.eup %2802  ;;  %v1726_v41 = vpop.xlane.xlu0 %1725 }
 0x200   : > { %2816 = vpow2.f32 %v1825_v60  ;;  %v1827_v44 = vmul.f32 1.442695, %v1780_v59  ;;  %v1777_v31 = vsub.f32 %v3495_v24, %v1726_v41  ;;  %1875 = vadd.xlane.f32.xlu1 %v3609_v33 }
 0x201   : > { %v3613_v28 = vpop.eup %2804  ;;  %v1728_v3 = vpop.xlane.xlu1 %1727 }
 0x202   : > { %2818 = vpow2.f32 %v1827_v44  ;;  %v1821_v19 = vmul.f32 1.442695, %v1777_v31  ;;  %v1778_v40 = vsub.f32 %v3503_v45, %v1728_v3  ;;  %1869 = vadd.xlane.f32.xlu0 %v3613_v28 }
 0x203   : > { %v3617_v5 = vpop.eup %2806  ;;  %v1738_v12 = vpop.xlane.xlu0 %1737 }
 0x204   : > { %2820 = vpow2.f32 %v1821_v19  ;;  %v1823_v9 = vmul.f32 1.442695, %v1778_v40  ;;  %v1783_v26 = vsub.f32 %v3508_v23, %v1738_v12  ;;  %1871 = vadd.xlane.f32.xlu1 %v3617_v5 }
 0x205   : > { %v3621_v24 = vpop.eup %2808  ;;  %v1740_v29 = vpop.xlane.xlu1 %1739 }
 0x206   : > { %2822 = vpow2.f32 %v1823_v9  ;;  %v1833_v56 = vmul.f32 1.442695, %v1783_v26  ;;  %v1784_v53 = vsub.f32 %v3514_v54, %v1740_v29  ;;  %1881 = vadd.xlane.f32.xlu0 %v3621_v24 }
 0x207   : > { %v3625_v45 = vpop.eup %2810  ;;  %v1734_v8 = vpop.xlane.xlu0 %1733 }
 0x208   : > { %2824 = vpow2.f32 %v1833_v56  ;;  %v1835_v43 = vmul.f32 1.442695, %v1784_v53  ;;  %v1781_v18 = vsub.f32 %v3519_v2, %v1734_v8  ;;  %1883 = vadd.xlane.f32.xlu1 %v3625_v45 }
 0x209   : > { %v3629_v23 = vpop.eup %2812  ;;  %v1736_v62 = vpop.xlane.xlu1 %1735 }
 0x20a   : > { %2826 = vpow2.f32 %v1835_v43  ;;  %v1829_v0 = vmul.f32 1.442695, %v1781_v18  ;;  %v1782_v63 = vsub.f32 %v3526_v16, %v1736_v62  ;;  %1877 = vadd.xlane.f32.xlu0 %v3629_v23 }
 0x20b   : > { %v3633_v54 = vpop.eup %2814  ;;  %v1746_v6 = vpop.xlane.xlu0 %1745 }
 0x20c   : > { %2828 = vpow2.f32 %v1829_v0  ;;  %v1831_v15 = vmul.f32 1.442695, %v1782_v63  ;;  %v1787_v10 = vsub.f32 %v3533_v1, %v1746_v6  ;;  %1879 = vadd.xlane.f32.xlu1 %v3633_v54 }
 0x20d   : > { %v3637_v2 = vpop.eup %2816  ;;  %v1748_v51 = vpop.xlane.xlu1 %1747 }
 0x20e   : > { %2830 = vpow2.f32 %v1831_v15  ;;  %v1841_v38 = vmul.f32 1.442695, %v1787_v10  ;;  %v1788_v21 = vsub.f32 %v3538_v50, %v1748_v51  ;;  %1889 = vadd.xlane.f32.xlu0 %v3637_v2 }
 0x20f   : > { %v3641_v16 = vpop.eup %2818  ;;  %v1742_v4 = vpop.xlane.xlu0 %1741 }
 0x210   : > { %2832 = vpow2.f32 %v1841_v38  ;;  %v1843_v58 = vmul.f32 1.442695, %v1788_v21  ;;  %v1785_v42 = vsub.f32 %v3541_v32, %v1742_v4  ;;  %1891 = vadd.xlane.f32.xlu1 %v3641_v16 }
 0x211   : > { %v3645_v1 = vpop.eup %2820  ;;  %v1744_v20 = vpop.xlane.xlu1 %1743 }
 0x212   : > { %2834 = vpow2.f32 %v1843_v58  ;;  %v1837_v11 = vmul.f32 1.442695, %v1785_v42  ;;  %v1786_v55 = vsub.f32 %v3544_v35, %v1744_v20  ;;  %1885 = vadd.xlane.f32.xlu0 %v3645_v1 }
 0x213   : > { %v3649_v50 = vpop.eup %2822  ;;  %v1754_v14 = vpop.xlane.xlu0 %1753 }
 0x214   : > { %2836 = vpow2.f32 %v1837_v11  ;;  %v1839_v13 = vmul.f32 1.442695, %v1786_v55  ;;  %v1791_v46 = vsub.f32 %v3548_v36, %v1754_v14  ;;  %1887 = vadd.xlane.f32.xlu1 %v3649_v50 }
 0x215   : > { %v3653_v32 = vpop.eup %2824  ;;  %v1756_v57 = vpop.xlane.xlu1 %1755 }
 0x216   : > { %2838 = vpow2.f32 %v1839_v13  ;;  %v1849_v25 = vmul.f32 1.442695, %v1791_v46  ;;  %v1792_v7 = vsub.f32 %v3553_v37, %v1756_v57  ;;  %1897 = vadd.xlane.f32.xlu0 %v3653_v32 }
 0x217   : > { %v3657_v35 = vpop.eup %2826  ;;  %v1750_v60 = vpop.xlane.xlu0 %1749 }
 0x218   : > { %2840 = vpow2.f32 %v1849_v25  ;;  %v1851_v59 = vmul.f32 1.442695, %v1792_v7  ;;  %v1789_v41 = vsub.f32 %v3556_v49, %v1750_v60  ;;  %1899 = vadd.xlane.f32.xlu1 %v3657_v35 }
 0x219   : > { %v3661_v36 = vpop.eup %2828  ;;  %v1752_v44 = vpop.xlane.xlu1 %1751 }
 0x21a   : > { %2842 = vpow2.f32 %v1851_v59  ;;  %v1845_v31 = vmul.f32 1.442695, %v1789_v41  ;;  %v1790_v3 = vsub.f32 %v3560_v22, %v1752_v44  ;;  %1893 = vadd.xlane.f32.xlu0 %v3661_v36 }
 0x21b   : > { %v3665_v37 = vpop.eup %2830  ;;  %v1758_v19 = vpop.xlane.xlu0 %1757 }
 0x21c   : > { %2844 = vpow2.f32 %v1845_v31  ;;  %v1847_v40 = vmul.f32 1.442695, %v1790_v3  ;;  %v1793_v12 = vsub.f32 %v3564_v27, %v1758_v19  ;;  %1895 = vadd.xlane.f32.xlu1 %v3665_v37 }
 0x21d   : > { %v3669_v49 = vpop.eup %2832 }
 0x21e   : > { %2846 = vpow2.f32 %v1847_v40  ;;  %v1853_v9 = vmul.f32 1.442695, %v1793_v12  ;;  %1905 = vadd.xlane.f32.xlu0 %v3669_v49 }
 0x21f   : > { %v3672_v26 = vpop.eup %2834  ;;  %v1760_v22 = vpop.xlane.xlu1 %1759 }
 0x220   : > { %v1762_v29 = vpop.xlane.xlu0 %1761  ;;  %2848 = vpow2.f32 %v1853_v9  ;;  %v1794_v56 = vsub.f32 %v3570_v52, %v1760_v22  ;;  %1907 = vadd.xlane.f32.xlu1 %v3672_v26 }
 0x221   : > { %v1795_v53 = vsub.f32 %v3572_v30, %v1762_v29  ;;  %v3677_v27 = vpop.eup %2836 }
 0x222   : > { %v1855_v8 = vmul.f32 1.442695, %v1794_v56  ;;  %1901 = vadd.xlane.f32.xlu0 %v3677_v27 }
 0x223   : > { %v1857_v43 = vmul.f32 1.442695, %v1795_v53  ;;  %v3680_v18 = vpop.eup %2838  ;;  %v1764_v62 = vpop.xlane.xlu1 %1763 }
 0x224   : > { %2850 = vpow2.f32 %v1855_v8  ;;  %v1796_v0 = vsub.f32 %v3577_v34, %v1764_v62  ;;  %1903 = vadd.xlane.f32.xlu1 %v3680_v18 }
 0x225   : > { %v3684_v63 = vpop.eup %2840  ;;  %2852 = vpow2.f32 %v1857_v43 }
 0x226   : > { %v1859_v52 = vmul.f32 1.442695, %v1796_v0  ;;  %1913 = vadd.xlane.f32.xlu0 %v3684_v63 }
 0x227   : > { %v3687_v30 = vpop.eup %2842 }
 0x228   : > { %2854 = vpow2.f32 %v1859_v52  ;;  %1915 = vadd.xlane.f32.xlu1 %v3687_v30 }
 0x229   : > { %v3690_v6 = vpop.eup %2844 }
 0x22a   : > { %1909 = vadd.xlane.f32.xlu0 %v3690_v6 }
 0x22b   : > { %v3693_v15 = vpop.eup %2846 }
 0x22c   : > { %1911 = vadd.xlane.f32.xlu1 %v3693_v15 }
 0x22d   : > { %v3696_v34 = vpop.eup %2848 }
 0x22e   : > { %1917 = vadd.xlane.f32.xlu0 %v3696_v34 }
 0x231   : > { %v3699_v10 = vpop.eup %2850 }
 0x232   : > { %v3701_v51 = vpop.eup %2852  ;;  %1919 = vadd.xlane.f32.xlu1 %v3699_v10 }
 0x233   : > { %1921 = vadd.xlane.f32.xlu0 %v3701_v51 }
 0x235   : > { %v3705_v38 = vpop.eup %2854 }
 0x236   : > { %1923 = vadd.xlane.f32.xlu1 %v3705_v38 }
 0x27d   : > { %v1866_v21 = vpop.xlane.xlu0 %1865 }
 0x27e   : > { %2856 = vrcp.f32 %v1866_v21 }
 0x281   : > { %v1868_v4 = vpop.xlane.xlu1 %1867  ;;  %v1862_v58 = vpop.xlane.xlu0 %1861 }
 0x282   : > { %2858 = vrcp.f32 %v1868_v4 }
 0x283   : > { %2860 = vrcp.f32 %v1862_v58 }
 0x285   : > { %v1864_v42 = vpop.xlane.xlu1 %1863 }
 0x286   : > { %2862 = vrcp.f32 %v1864_v42 }
 0x287   : > { %v1874_v20 = vpop.xlane.xlu0 %1873 }
 0x288   : > { %2864 = vrcp.f32 %v1874_v20 }
 0x289   : > { %v1876_v11 = vpop.xlane.xlu1 %1875 }
 0x28a   : > { %2866 = vrcp.f32 %v1876_v11 }
 0x28b   : > { %v2857_v55 = vpop.eup %2856  ;;  %v1870_v14 = vpop.xlane.xlu0 %1869 }
 0x28c   : > { %v1959_v13 = vmul.f32 %v2857_v55, %v3588_v39  ;;  %2868 = vrcp.f32 %v1870_v14 }
 0x28d   : > { %v1872_v46 = vpop.xlane.xlu1 %1871 }
 0x28e   : > { %1991 = vst [vmem:[%s3712_s20 + $0x10] sm:$0xff] %v1959_v13  ;;  %2870 = vrcp.f32 %v1872_v46 }
 0x28f   : > { %v2859_v57 = vpop.eup %2858  ;;  %v1882_v25 = vpop.xlane.xlu0 %1881 }
 0x290   : > { %v2861_v7 = vpop.eup %2860  ;;  %v1960_v60 = vmul.f32 %v2859_v57, %v3595_v17  ;;  %2872 = vrcp.f32 %v1882_v25 }
 0x291   : > { %v1957_v59 = vmul.f32 %v2861_v7, %v3592_v48  ;;  %v1884_v39 = vpop.xlane.xlu1 %1883 }
 0x292   : > { %1992 = vst [vmem:[%s3712_s20 + $0x18] sm:$0xff] %v1960_v60  ;;  %2874 = vrcp.f32 %v1884_v39 }
 0x293   : > { %v2863_v41 = vpop.eup %2862  ;;  %1989 = vst [vmem:[%s3712_s20] sm:$0xff] %v1957_v59  ;;  %v1878_v44 = vpop.xlane.xlu0 %1877 }
 0x294   : > { %v1958_v31 = vmul.f32 %v2863_v41, %v3601_v47  ;;  %2876 = vrcp.f32 %v1878_v44 }
 0x295   : > { %v2865_v3 = vpop.eup %2864  ;;  %v1880_v19 = vpop.xlane.xlu1 %1879 }
 0x296   : > { %1990 = vst [vmem:[%s3712_s20 + $0x8] sm:$0xff] %v1958_v31  ;;  %v1963_v17 = vmul.f32 %v2865_v3, %v3605_v61  ;;  %2878 = vrcp.f32 %v1880_v19 }
 0x297   : > { %v2867_v40 = vpop.eup %2866  ;;  %v1890_v48 = vpop.xlane.xlu0 %1889 }
 0x298   : > { %1995 = vst [vmem:[%s3712_s20 + $0x30] sm:$0xff] %v1963_v17  ;;  %v1964_v12 = vmul.f32 %v2867_v40, %v3609_v33  ;;  %2880 = vrcp.f32 %v1890_v48 }
 0x299   : > { %v2869_v9 = vpop.eup %2868  ;;  %v1892_v22 = vpop.xlane.xlu1 %1891 }
 0x29a   : > { %1996 = vst [vmem:[%s3712_s20 + $0x38] sm:$0xff] %v1964_v12  ;;  %v1961_v47 = vmul.f32 %v2869_v9, %v3613_v28  ;;  %2882 = vrcp.f32 %v1892_v22 }
 0x29b   : > { %v2871_v29 = vpop.eup %2870  ;;  %v1886_v56 = vpop.xlane.xlu0 %1885 }
 0x29c   : > { %1993 = vst [vmem:[%s3712_s20 + $0x20] sm:$0xff] %v1961_v47  ;;  %v1962_v61 = vmul.f32 %v2871_v29, %v3617_v5  ;;  %2884 = vrcp.f32 %v1886_v56 }
 0x29d   : > { %v2873_v53 = vpop.eup %2872  ;;  %v1888_v8 = vpop.xlane.xlu1 %1887 }
 0x29e   : > { %1994 = vst [vmem:[%s3712_s20 + $0x28] sm:$0xff] %v1962_v61  ;;  %v1967_v33 = vmul.f32 %v2873_v53, %v3621_v24  ;;  %2886 = vrcp.f32 %v1888_v8 }
 0x29f   : > { %v2875_v43 = vpop.eup %2874  ;;  %v1898_v62 = vpop.xlane.xlu0 %1897 }
 0x2a0   : > { %1999 = vst [vmem:[%s3712_s20 + $0x50] sm:$0xff] %v1967_v33  ;;  %v1968_v28 = vmul.f32 %v2875_v43, %v3625_v45  ;;  %2888 = vrcp.f32 %v1898_v62 }
 0x2a1   : > { %v2877_v0 = vpop.eup %2876  ;;  %v1900_v52 = vpop.xlane.xlu1 %1899 }
 0x2a2   : > { %2000 = vst [vmem:[%s3712_s20 + $0x58] sm:$0xff] %v1968_v28  ;;  %v1965_v5 = vmul.f32 %v2877_v0, %v3629_v23  ;;  %2890 = vrcp.f32 %v1900_v52 }
 0x2a3   : > { %v2879_v21 = vpop.eup %2878  ;;  %v1894_v4 = vpop.xlane.xlu0 %1893 }
 0x2a4   : > { %1997 = vst [vmem:[%s3712_s20 + $0x40] sm:$0xff] %v1965_v5  ;;  %v1966_v24 = vmul.f32 %v2879_v21, %v3633_v54  ;;  %2892 = vrcp.f32 %v1894_v4 }
 0x2a5   : > { %v2881_v58 = vpop.eup %2880  ;;  %v1896_v42 = vpop.xlane.xlu1 %1895 }
 0x2a6   : > { %1998 = vst [vmem:[%s3712_s20 + $0x48] sm:$0xff] %v1966_v24  ;;  %v1971_v45 = vmul.f32 %v2881_v58, %v3637_v2  ;;  %2894 = vrcp.f32 %v1896_v42 }
 0x2a7   : > { %v2883_v20 = vpop.eup %2882  ;;  %v1906_v11 = vpop.xlane.xlu0 %1905 }
 0x2a8   : > { %2003 = vst [vmem:[%s3712_s20 + $0x70] sm:$0xff] %v1971_v45  ;;  %v1972_v23 = vmul.f32 %v2883_v20, %v3641_v16  ;;  %2896 = vrcp.f32 %v1906_v11 }
 0x2a9   : > { %v2885_v55 = vpop.eup %2884  ;;  %v1908_v14 = vpop.xlane.xlu1 %1907 }
 0x2aa   : > { %2004 = vst [vmem:[%s3712_s20 + $0x78] sm:$0xff] %v1972_v23  ;;  %v1969_v54 = vmul.f32 %v2885_v55, %v3645_v1  ;;  %2898 = vrcp.f32 %v1908_v14 }
 0x2ab   : > { %v2887_v13 = vpop.eup %2886  ;;  %v1902_v46 = vpop.xlane.xlu0 %1901 }
 0x2ac   : > { %2001 = vst [vmem:[%s3712_s20 + $0x60] sm:$0xff] %v1969_v54  ;;  %v1970_v2 = vmul.f32 %v2887_v13, %v3649_v50  ;;  %2900 = vrcp.f32 %v1902_v46 }
 0x2ad   : > { %v2889_v57 = vpop.eup %2888  ;;  %v1904_v25 = vpop.xlane.xlu1 %1903 }
 0x2ae   : > { %2002 = vst [vmem:[%s3712_s20 + $0x68] sm:$0xff] %v1970_v2  ;;  %v1975_v16 = vmul.f32 %v2889_v57, %v3653_v32  ;;  %2902 = vrcp.f32 %v1904_v25 }
 0x2af   : > { %v2891_v7 = vpop.eup %2890  ;;  %v1914_v60 = vpop.xlane.xlu0 %1913 }
 0x2b0   : > { %2007 = vst [vmem:[%s3712_s20 + $0x90] sm:$0xff] %v1975_v16  ;;  %v1976_v1 = vmul.f32 %v2891_v7, %v3657_v35  ;;  %2904 = vrcp.f32 %v1914_v60 }
 0x2b1   : > { %v2893_v59 = vpop.eup %2892  ;;  %v1916_v39 = vpop.xlane.xlu1 %1915 }
 0x2b2   : > { %2008 = vst [vmem:[%s3712_s20 + $0x98] sm:$0xff] %v1976_v1  ;;  %v1973_v50 = vmul.f32 %v2893_v59, %v3661_v36  ;;  %2906 = vrcp.f32 %v1916_v39 }
 0x2b3   : > { %v2895_v41 = vpop.eup %2894  ;;  %v1910_v44 = vpop.xlane.xlu0 %1909 }
 0x2b4   : > { %2005 = vst [vmem:[%s3712_s20 + $0x80] sm:$0xff] %v1973_v50  ;;  %v1974_v32 = vmul.f32 %v2895_v41, %v3665_v37  ;;  %2908 = vrcp.f32 %v1910_v44 }
 0x2b5   : > { %v2897_v31 = vpop.eup %2896  ;;  %v1912_v3 = vpop.xlane.xlu1 %1911 }
 0x2b6   : > { %2006 = vst [vmem:[%s3712_s20 + $0x88] sm:$0xff] %v1974_v32  ;;  %v1979_v35 = vmul.f32 %v2897_v31, %v3669_v49  ;;  %2910 = vrcp.f32 %v1912_v3 }
 0x2b7   : > { %v2899_v19 = vpop.eup %2898  ;;  %v1918_v17 = vpop.xlane.xlu0 %1917 }
 0x2b8   : > { %2011 = vst [vmem:[%s3712_s20 + $0xb0] sm:$0xff] %v1979_v35  ;;  %v1980_v36 = vmul.f32 %v2899_v19, %v3672_v26  ;;  %2912 = vrcp.f32 %v1918_v17 }
 0x2b9   : > { %v2901_v40 = vpop.eup %2900 }
 0x2ba   : > { %2012 = vst [vmem:[%s3712_s20 + $0xb8] sm:$0xff] %v1980_v36  ;;  %v1977_v37 = vmul.f32 %v2901_v40, %v3677_v27 }
 0x2bb   : > { %v2903_v48 = vpop.eup %2902  ;;  %v1920_v12 = vpop.xlane.xlu1 %1919 }
 0x2bc   : > { %2009 = vst [vmem:[%s3712_s20 + $0xa0] sm:$0xff] %v1977_v37  ;;  %v1978_v9 = vmul.f32 %v2903_v48, %v3680_v18  ;;  %2914 = vrcp.f32 %v1920_v12  ;;  %v1922_v49 = vpop.xlane.xlu0 %1921 }
 0x2bd   : > { %v2905_v22 = vpop.eup %2904  ;;  %2916 = vrcp.f32 %v1922_v49 }
 0x2be   : > { %2010 = vst [vmem:[%s3712_s20 + $0xa8] sm:$0xff] %v1978_v9  ;;  %v1983_v26 = vmul.f32 %v2905_v22, %v3684_v63 }
 0x2bf   : > { %v2907_v47 = vpop.eup %2906  ;;  %v1924_v29 = vpop.xlane.xlu1 %1923 }
 0x2c0   : > { %2015 = vst [vmem:[%s3712_s20 + $0xd0] sm:$0xff] %v1983_v26  ;;  %v1984_v27 = vmul.f32 %v2907_v47, %v3687_v30  ;;  %2918 = vrcp.f32 %v1924_v29 }
 0x2c1   : > { %v2909_v56 = vpop.eup %2908 }
 0x2c2   : > { %2016 = vst [vmem:[%s3712_s20 + $0xd8] sm:$0xff] %v1984_v27  ;;  %v1981_v18 = vmul.f32 %v2909_v56, %v3690_v6 }
 0x2c3   : > { %v2911_v61 = vpop.eup %2910 }
 0x2c4   : > { %2013 = vst [vmem:[%s3712_s20 + $0xc0] sm:$0xff] %v1981_v18  ;;  %v1982_v53 = vmul.f32 %v2911_v61, %v3693_v15 }
 0x2c5   : > { %v2913_v8 = vpop.eup %2912 }
 0x2c6   : > { %2014 = vst [vmem:[%s3712_s20 + $0xc8] sm:$0xff] %v1982_v53  ;;  %v1985_v63 = vmul.f32 %v2913_v8, %v3696_v34 }
 0x2c8   : > { %2017 = vst [vmem:[%s3712_s20 + $0xe0] sm:$0xff] %v1985_v63 }
 0x2c9   : > { %v2915_v30 = vpop.eup %2914 }
 0x2ca   : > { %v2917_v33 = vpop.eup %2916  ;;  %v1986_v43 = vmul.f32 %v2915_v30, %v3699_v10 }
 0x2cb   : > { %v1987_v6 = vmul.f32 %v2917_v33, %v3701_v51 }
 0x2cc   : > { %2018 = vst [vmem:[%s3712_s20 + $0xe8] sm:$0xff] %v1986_v43 }
 0x2cd   : > { %v2919_v62 = vpop.eup %2918  ;;  %2019 = vst [vmem:[%s3712_s20 + $0xf0] sm:$0xff] %v1987_v6 }
 0x2ce   : > { %v1988_v15 = vmul.f32 %v2919_v62, %v3705_v38 }
 0x2d0   : > { %2020 = vst [vmem:[%s3712_s20 + $0xf8] sm:$0xff] %v1988_v15 }
 0x2d1   : > { %2933 = shalt.err (!%p2930_p5)
}
 0x2d2   : > { %s2934_s5 = scalar_lea.hbm %s3780_s25, 4096  ;;  %s2938_s8 = scalar_lea.hbm %s3835_s2, 8192 }
 0x2d3   : > { %p2935_p6 = scmp.ne.s32.totalorder %s3780_s25, %s2934_s5  ;;  %p2939_p10 = scmp.lt.s32.totalorder %s3780_s25, %s3835_s2 }
 0x2d4   : > { %p2940_p11 = scmp.lt.s32.totalorder %s2938_s8, %s2934_s5 }
 0x2d5   : > { %p2936_p7 = pnand %p2935_p6, %p3056_p4 }
 0x2d6   : > { %p2941_p12 = por %p2940_p11, %p2939_p10 }
 0x2d7   : > { %p2937_p9 = pneg %p2936_p7 }
 0x2d9   : > { %p2942_p13 = pnand %p2941_p12, %p2937_p9 }
 0x2db   : > { %2945 = shalt.err (!%p2942_p13)
}
 0x2dc   : > { %s2999_s28 = smov 128   ;;  %s3000_s18 = smov 8  }
 0x2dd   : > { %2583 = dma.vmem_to_hbm [thread:$0]  (%p3056_p4), %s3782_s24, 4096, %s3780_s25, %s3788_s12, %s2999_s28, %s2999_s28, %s3000_s18  }
 0x2de PF: > { %p2589_p0 = scmp.ge.s32.totalorder %s2996_s14, 2  ;;  %s2051_s20 = sand.u32 1, %s2976_s9  }
 0x2df   : > { %s2052_s23 = scalar_lea.sflag [#allocation4], %s2051_s20 }
 0x2e0   : > { %p2586_p1 = pnand %p2589_p0, %p3063_p8 }
 0x2e2   : > { %p2587_p2 = pneg %p2586_p1 }
 0x2e4   : > { %2971 = dma.done.wait (%p2587_p2), %s2052_s23, 4096  }
 0x2e5   : > { %2973 = vsyncadd (%p2587_p2), %s2052_s23, 4294963200  ;;  %s15_s14 = sadd.s32 1, %s2996_s14   ;;  %s3874_s9 = smov %s2980_s10 }
 0x2e6   : > { %p12_p3 = scmp.ge.s32.totalorder %s15_s14, 4   ;;  %s3875_s10 = smov %s2984_s11 }
 0x2e7   : > { %s3876_s11 = smov %s3069_s22  ;;  %s3877_s12 = smov %s2992_s13 }
 0x2e8   : > { %s3878_s13 = smov %s3880_s17  ;;  %14 = sbr.rel (!%p12_p3) target bundleno = 4 (0x4), region = 74 }
 0x2ed   :  { %2057 = vsyncpa [#allocation4], 1 }
 0x2ee   :  { %2059 = vsyncpa [#allocation4 + $0x1], 1 }

</bundles_post_ra>
